<compile_context>
chip_gen: v5e
topology: v5e:2x2
jax: 0.10.0
libtpu: 0.0.40
codegen_flags: <defaults>
</compile_context>

<pallas_src>
import jax
import jax.numpy as jnp
from jax.experimental import pallas as pl
from jax.experimental.pallas import tpu as pltpu

EPS = 1e-5
LANE = 128   # TPU lane width: pad all channel / K dims to this


# --------------------- generation-aware tiling config -----------------------

def _vmem_capacity_bytes():
    try:
        info = pltpu.get_tpu_info()
        for attr in ("vmem_capacity_bytes", "vmem_bytes", "vmem_size_bytes"):
            v = getattr(info, attr, None)
            if v:
                return int(v)
    except Exception:
        pass
    # Conservative fallback (safe on every generation, incl. v7x's 64 MiB/TC).
    return 64 << 20


_VMEM_BYTES = _vmem_capacity_bytes()
_SMALL_VMEM = _VMEM_BYTES <= (64 << 20)            # v7x-like: 64 MiB per TC
# Matmul row tile: 512 rows already ~85% of HBM roofline; 1024 only where the
# 128-MiB VMEM parts (v5e/v6e) give room for the deeper pipeline.
TM_MATMUL = 512 if _SMALL_VMEM else 1024
# vmem_limit ceiling: leave headroom under physical VMEM ("parallel" grid puts
# an independent pipeline on each v7x TensorCore).
VMEM_LIMIT_CAP = min((48 << 20) if _SMALL_VMEM else (100 << 20),
                     int(0.75 * _VMEM_BYTES))
# NOTE: pl.Buffered(3) on the patch spec is a further option on v5e/v6e; the
# bigger TM already provides the pipeline depth so it is not used here.


def _rup(x, m):
    return ((x + m - 1) // m) * m


def _pad2(a, rows, cols):
    return jnp.pad(a, ((0, rows - a.shape[0]), (0, cols - a.shape[1])))


def _pad1(v, n):
    return jnp.pad(v, (0, n - v.shape[0]))


def _choose_tm(m):
    """Matmul row tile: TM_MATMUL, shrunk for tiny problems (multiple of 16)."""
    t = TM_MATMUL
    while t > 16 and t > _rup(m, 16):
        t //= 2
    return t


def _ew_tile(mp, tm):
    """Row tile for the element-wise phase-2 kernels: as large as divides Mp,
    capped at 2048 rows (their per-tile footprint is only a few MiB)."""
    for mult in (16, 8, 4, 2):
        t = tm * mult
        if t <= 2048 and mp % t == 0:
            return t
    return tm


# ----------------------------- Pallas kernels ------------------------------

def _partial_stats(conv_f32, chunk=256):
    """Per-channel (sum, sum-of-squares) of an f32 tile, reduced over row
    chunks so the conv*conv temporary never exceeds chunk x C (keeps the
    VPU/XLU stats work as free filler under the MXU instead of spilling)."""
    rows, c = conv_f32.shape
    s = jnp.zeros((1, c), jnp.float32)
    ssq = jnp.zeros((1, c), jnp.float32)
    r0 = 0
    while r0 < rows:
        blk = conv_f32[r0:min(r0 + chunk, rows), :]
        s = s + jnp.sum(blk, axis=0, keepdims=True)
        ssq = ssq + jnp.sum(blk * blk, axis=0, keepdims=True)
        r0 += chunk
    return s, ssq


def matmul_stats_kernel(p_ref, w_ref, conv_ref, stats_ref):
    # One M-tile of conv-as-matmul (bf16 in, f32 accumulate) + partial BN
    # stats taken from the f32 accumulator, then the conv tile stored as bf16.
    conv = jnp.dot(p_ref[...], w_ref[...], preferred_element_type=jnp.float32)
    s, ssq = _partial_stats(conv)
    conv_ref[...] = conv.astype(conv_ref.dtype)
    pad = jnp.zeros((6, conv.shape[1]), jnp.float32)   # pad stats to 8 sublanes
    stats_ref[...] = jnp.concatenate([s, ssq, pad], axis=0)


def matmul2_stats_kernel(p_ref, x_ref, w2_ref, ws_ref, conv_ref, stats_ref):
    # conv2 + 1x1 projection shortcut as TWO dots (no zero-block MXU work),
    # writing the two 128-lane-aligned halves of one [conv2 | shortcut] tile.
    cp = w2_ref.shape[1]
    c2 = jnp.dot(p_ref[...], w2_ref[...], preferred_element_type=jnp.float32)
    sc = jnp.dot(x_ref[...], ws_ref[...], preferred_element_type=jnp.float32)
    s2, ssq2 = _partial_stats(c2)
    ss, ssqs = _partial_stats(sc)
    conv_ref[:, :cp] = c2.astype(conv_ref.dtype)
    conv_ref[:, cp:] = sc.astype(conv_ref.dtype)
    pad = jnp.zeros((6, 2 * cp), jnp.float32)
    stats_ref[...] = jnp.concatenate(
        [jnp.concatenate([s2, ss], axis=1),
         jnp.concatenate([ssq2, ssqs], axis=1),
         pad], axis=0)


def bn_relu_kernel(conv_ref, s_ref, t_ref, o_ref):
    # Folded BN (single FMA) + ReLU.
    y = conv_ref[...].astype(jnp.float32) * s_ref[...] + t_ref[...]
    o_ref[...] = jnp.maximum(y, 0.0).astype(o_ref.dtype)


def bn_add_relu_kernel(conv_ref, s_ref, t_ref, res_ref, o_ref):
    # Folded BN + identity residual (bf16) + ReLU.
    y = (conv_ref[...].astype(jnp.float32) * s_ref[...] + t_ref[...]
         + res_ref[...].astype(jnp.float32))
    o_ref[...] = jnp.maximum(y, 0.0).astype(o_ref.dtype)


def bn_dual_add_relu_kernel(conv_ref, s_ref, t_ref, o_ref):
    # conv_ref holds [conv2 | shortcut] halves (each a multiple of 128 lanes):
    # apply the two folded BNs in one FMA, add the halves, ReLU.
    y = conv_ref[...].astype(jnp.float32) * s_ref[...] + t_ref[...]
    cp = y.shape[1] // 2
    o_ref[...] = jnp.maximum(y[:, :cp] + y[:, cp:], 0.0).astype(o_ref.dtype)


# --------------------------- pallas_call wrappers ---------------------------

def _cparams(tile_bytes):
    # ~2x per buffer for double-buffering plus headroom, under the
    # generation-aware ceiling.
    limit = int(min(max(4 * tile_bytes + (4 << 20), 16 << 20), VMEM_LIMIT_CAP))
    return pltpu.CompilerParams(dimension_semantics=("parallel",),
                                vmem_limit_bytes=limit)


def _conv_matmul_stats(patches, weights, tm):
    mp, kp = patches.shape
    co = weights.shape[1]
    nt = mp // tm
    tile_bytes = tm * kp * 2 + kp * co * 2 + tm * co * 2 + 8 * co * 4
    conv, stats = pl.pallas_call(
        matmul_stats_kernel,
        grid=(nt,),
        in_specs=[pl.BlockSpec((tm, kp), lambda i: (i, 0)),
                  pl.BlockSpec((kp, co), lambda i: (0, 0))],   # resident weight
        out_specs=[pl.BlockSpec((tm, co), lambda i: (i, 0)),
                   pl.BlockSpec((8, co), lambda i: (i, 0))],
        out_shape=[jax.ShapeDtypeStruct((mp, co), jnp.bfloat16),
                   jax.ShapeDtypeStruct((nt * 8, co), jnp.float32)],
        compiler_params=_cparams(tile_bytes),
        cost_estimate=pl.CostEstimate(
            flops=2 * mp * kp * co,
            transcendentals=0,
            bytes_accessed=int(patches.size * 2 + weights.size * 2
                               + mp * co * 2 + nt * 8 * co * 4)),
    )(patches, weights)
    return conv, stats


def _conv_matmul2_stats(p2, xs, w2, ws, tm):
    mp, k2p = p2.shape
    cinp = xs.shape[1]
    cp = w2.shape[1]
    nt = mp // tm
    tile_bytes = (tm * k2p * 2 + tm * cinp * 2 + k2p * cp * 2 + cinp * cp * 2
                  + tm * 2 * cp * 2 + 8 * 2 * cp * 4)
    conv, stats = pl.pallas_call(
        matmul2_stats_kernel,
        grid=(nt,),
        in_specs=[pl.BlockSpec((tm, k2p), lambda i: (i, 0)),
                  pl.BlockSpec((tm, cinp), lambda i: (i, 0)),
                  pl.BlockSpec((k2p, cp), lambda i: (0, 0)),
                  pl.BlockSpec((cinp, cp), lambda i: (0, 0))],
        out_specs=[pl.BlockSpec((tm, 2 * cp), lambda i: (i, 0)),
                   pl.BlockSpec((8, 2 * cp), lambda i: (i, 0))],
        out_shape=[jax.ShapeDtypeStruct((mp, 2 * cp), jnp.bfloat16),
                   jax.ShapeDtypeStruct((nt * 8, 2 * cp), jnp.float32)],
        compiler_params=_cparams(tile_bytes),
        cost_estimate=pl.CostEstimate(
            flops=2 * mp * (k2p + cinp) * cp,
            transcendentals=0,
            bytes_accessed=int(p2.size * 2 + xs.size * 2 + w2.size * 2
                               + ws.size * 2 + mp * 2 * cp * 2
                               + nt * 8 * 2 * cp * 4)),
    )(p2, xs, w2, ws)
    return conv, stats


def _bn_relu(conv, scale, shift, out_dtype, tm):
    mp, c = conv.shape
    te = _ew_tile(mp, tm)
    nt = mp // te
    return pl.pallas_call(
        bn_relu_kernel,
        grid=(nt,),
        in_specs=[pl.BlockSpec((te, c), lambda i: (i, 0)),
                  pl.BlockSpec((1, c), lambda i: (0, 0)),
                  pl.BlockSpec((1, c), lambda i: (0, 0))],
        out_specs=pl.BlockSpec((te, c), lambda i: (i, 0)),
        out_shape=jax.ShapeDtypeStruct((mp, c), out_dtype),
        compiler_params=_cparams(te * c * 2 * 2 + 2 * c * 4),
    )(conv, scale, shift)


def _bn_add_relu(conv, scale, shift, res, tm):
    mp, c = conv.shape
    te = _ew_tile(mp, tm)
    nt = mp // te
    return pl.pallas_call(
        bn_add_relu_kernel,
        grid=(nt,),
        in_specs=[pl.BlockSpec((te, c), lambda i: (i, 0)),
                  pl.BlockSpec((1, c), lambda i: (0, 0)),
                  pl.BlockSpec((1, c), lambda i: (0, 0)),
                  pl.BlockSpec((te, c), lambda i: (i, 0))],
        out_specs=pl.BlockSpec((te, c), lambda i: (i, 0)),
        out_shape=jax.ShapeDtypeStruct((mp, c), jnp.bfloat16),
        compiler_params=_cparams(te * c * 2 * 3 + 2 * c * 4),
    )(conv, scale, shift, res)


def _bn_dual_add_relu(conv, scale, shift, tm):
    mp, c2 = conv.shape
    c = c2 // 2
    te = _ew_tile(mp, tm)
    nt = mp // te
    return pl.pallas_call(
        bn_dual_add_relu_kernel,
        grid=(nt,),
        in_specs=[pl.BlockSpec((te, c2), lambda i: (i, 0)),
                  pl.BlockSpec((1, c2), lambda i: (0, 0)),
                  pl.BlockSpec((1, c2), lambda i: (0, 0))],
        out_specs=pl.BlockSpec((te, c), lambda i: (i, 0)),
        out_shape=jax.ShapeDtypeStruct((mp, c), jnp.bfloat16),
        compiler_params=_cparams(te * c2 * 2 + te * c * 2 + 2 * c2 * 4),
    )(conv, scale, shift)


# ------------------------------- glue (JAX) --------------------------------

def im2col3x3(x_nhwc, stride):
    """3x3, pad=1 im2col. Returns [N*Ho*Wo, 9*C] with K ordered (kh, kw, cin)."""
    N, H, W, C = x_nhwc.shape
    Ho = (H + 2 - 3) // stride + 1
    Wo = (W + 2 - 3) // stride + 1
    xp = jnp.pad(x_nhwc, ((0, 0), (1, 1), (1, 1), (0, 0)))
    cols = []
    for kh in range(3):
        for kw in range(3):
            cols.append(xp[:, kh::stride, kw::stride, :][:, :Ho, :Wo, :])
    p = jnp.concatenate(cols, axis=-1)
    return p.reshape(N * Ho * Wo, 9 * C), Ho, Wo


def _w3x3_to_mat(w_pt):
    # PyTorch conv weight [Cout, Cin, kH, kW] -> [kH*kW*Cin, Cout]
    cout = w_pt.shape[0]
    return jnp.transpose(w_pt, (2, 3, 1, 0)).reshape(-1, cout)


def _scale_shift(stats, m_true, gamma_pad, beta_pad):
    """Reduce per-tile (sum, sumsq) partials -> folded BN scale/shift (f32)."""
    c = stats.shape[-1]
    tot = stats.reshape(-1, 8, c).sum(axis=0)
    mean = tot[0] / m_true
    var = jnp.maximum(tot[1] / m_true - mean * mean, 0.0)   # biased variance
    scale = gamma_pad * jax.lax.rsqrt(var + EPS)
    shift = beta_pad - mean * scale
    return scale.reshape(1, c), shift.reshape(1, c)


def basic_block_forward(x_nchw, params, *, stride):
    x = jnp.transpose(x_nchw, (0, 2, 3, 1)).astype(jnp.float32)   # NCHW -> NHWC
    N, H, W, Cin = x.shape
    planes = params["w1"].shape[0]
    cp = _rup(planes, LANE)

    # ---- conv1 (bf16 MXU) + partial BN stats ----
    # TODO(synk): im2col is still XLA glue; an in-kernel (kh,kw) reduction grid
    # axis over shifted NHWC windows would cut conv A-operand HBM traffic.
    p1, Ho, Wo = im2col3x3(x, stride)
    M = N * Ho * Wo
    tm = _choose_tm(M)
    Mp = _rup(M, tm)
    k1p = _rup(9 * Cin, LANE)
    p1 = _pad2(p1, Mp, k1p).astype(jnp.bfloat16)
    w1 = _pad2(_w3x3_to_mat(params["w1"]), k1p, cp).astype(jnp.bfloat16)
    conv1, stats1 = _conv_matmul_stats(p1, w1, tm)

    # ---- bn1 (folded) + relu; out1 kept bf16 for the second stage ----
    s1, t1 = _scale_shift(stats1, M, _pad1(params["g1"], cp), _pad1(params["b1"], cp))
    out1 = _bn_relu(conv1, s1, t1, jnp.bfloat16, tm)              # [Mp, cp] bf16

    # ---- conv2 patches (stride 1) ----
    out1_nhwc = out1[:M, :planes].reshape(N, Ho, Wo, planes)
    p2, _, _ = im2col3x3(out1_nhwc, 1)                            # [M, 9*planes] bf16
    k2 = 9 * planes
    k2p = _rup(k2, LANE)

    has_projection = (stride != 1) or (Cin != planes)
    if has_projection:
        # conv2 + 1x1 projection fused in one kernel as TWO dots writing the
        # two halves of a [conv2 | shortcut] output tile (no zero-block FLOPs).
        cinp = _rup(Cin, LANE)
        xs = x[:, ::stride, ::stride, :][:, :Ho, :Wo, :].reshape(M, Cin)
        p2p = _pad2(p2, Mp, k2p)                                  # bf16
        xsp = _pad2(xs, Mp, cinp).astype(jnp.bfloat16)
        w2 = _pad2(_w3x3_to_mat(params["w2"]), k2p, cp).astype(jnp.bfloat16)
        ws = _pad2(_w3x3_to_mat(params["ws"]), cinp, cp).astype(jnp.bfloat16)
        convc, statsc = _conv_matmul2_stats(p2p, xsp, w2, ws, tm)

        g_cat = jnp.concatenate([_pad1(params["g2"], cp), _pad1(params["gs"], cp)])
        b_cat = jnp.concatenate([_pad1(params["b2"], cp), _pad1(params["bs"], cp)])
        s2, t2 = _scale_shift(statsc, M, g_cat, b_cat)
        out = _bn_dual_add_relu(convc, s2, t2, tm)                # [Mp, cp] bf16
    else:
        assert Ho == H and Wo == W and Cin == planes              # identity shortcut
        p2p = _pad2(p2, Mp, k2p)
        w2 = _pad2(_w3x3_to_mat(params["w2"]), k2p, cp).astype(jnp.bfloat16)
        conv2, stats2 = _conv_matmul_stats(p2p, w2, tm)
        s2, t2 = _scale_shift(stats2, M,
                              _pad1(params["g2"], cp), _pad1(params["b2"], cp))
        res = _pad2(x.reshape(M, Cin), Mp, cp).astype(jnp.bfloat16)   # bf16 residual
        out = _bn_add_relu(conv2, s2, t2, res, tm)                # [Mp, cp] bf16

    out_nhwc = out[:M, :planes].reshape(N, Ho, Wo, planes)
    # NHWC -> NCHW; cast back to f32 to match the PyTorch module's interface.
    return jnp.transpose(out_nhwc, (0, 3, 1, 2)).astype(jnp.float32)


# ---------------------------- pure-JAX reference ----------------------------

def ref_block(x_nchw, params, stride):
    x = jnp.transpose(x_nchw, (0, 2, 3, 1)).astype(jnp.float32)

    def conv(inp, w_pt, s, pad):
        return jax.lax.conv_general_dilated(
            inp, jnp.transpose(w_pt, (2, 3, 1, 0)), (s, s), pad,
            dimension_numbers=("NHWC", "HWIO", "NHWC"),
            precision=jax.lax.Precision.HIGHEST)

    def bn(inp, g, b):
        m = inp.mean(axis=(0, 1, 2))
        v = jnp.mean((inp - m) ** 2, axis=(0, 1, 2))
        return (inp - m) * jax.lax.rsqrt(v + EPS) * g + b

    planes = params["w1"].shape[0]
    out = jax.nn.relu(bn(conv(x, params["w1"], stride, ((1, 1), (1, 1))),
                         params["g1"], params["b1"]))
    out = bn(conv(out, params["w2"], 1, ((1, 1), (1, 1))),
             params["g2"], params["b2"])
    if stride != 1 or x.shape[-1] != planes:
        sc = bn(conv(x, params["ws"], stride, "VALID"), params["gs"], params["bs"])
    else:
        sc = x
    return jnp.transpose(jax.nn.relu(out + sc), (0, 3, 1, 2))


# --------------------------------- params -----------------------------------

def init_params(key, in_planes, planes, stride):
    ks = jax.random.split(key, 8)
    p = {
        "w1": 0.1 * jax.random.normal(ks[0], (planes, in_planes, 3, 3), jnp.float32),
        "g1": 1.0 + 0.1 * jax.random.normal(ks[1], (planes,), jnp.float32),
        "b1": 0.1 * jax.random.normal(ks[2], (planes,), jnp.float32),
        "w2": 0.1 * jax.random.normal(ks[3], (planes, planes, 3, 3), jnp.float32),
        "g2": 1.0 + 0.1 * jax.random.normal(ks[4], (planes,), jnp.float32),
        "b2": 0.1 * jax.random.normal(ks[5], (planes,), jnp.float32),
    }
    if stride != 1 or in_planes != planes:
        p["ws"] = 0.1 * jax.random.normal(ks[6], (planes, in_planes, 1, 1), jnp.float32)
        p["gs"] = jnp.ones((planes,), jnp.float32)
        p["bs"] = 0.1 * jax.random.normal(ks[7], (planes,), jnp.float32)
    return p


if __name__ == "__main__":
    key = jax.random.PRNGKey(0)
    kx, kp = jax.random.split(key)
    x = jax.random.normal(kx, (2, 4, 16, 16), jnp.float32)   # NCHW, like PyTorch

    fwd = jax.jit(basic_block_forward, static_argnames=("stride",))

    # Case 1: projection shortcut (in_planes=4 -> planes=8, stride=2)
    params = init_params(kp, in_planes=4, planes=8, stride=2)
    out = jax.block_until_ready(fwd(x, params, stride=2))
    ref = ref_block(x, params, stride=2)
    assert out.shape == (2, 8, 8, 8), out.shape
    # bf16 MXU operands / bf16 intermediates vs f32 reference -> relaxed tol
    assert jnp.allclose(out, ref, atol=5e-2, rtol=5e-2), \
        float(jnp.max(jnp.abs(out - ref)))

    # Case 2: identity shortcut (in_planes=planes=4, stride=1)
    params_id = init_params(kp, in_planes=4, planes=4, stride=1)
    out_id = jax.block_until_ready(fwd(x, params_id, stride=1))
    ref_id = ref_block(x, params_id, stride=1)
    assert out_id.shape == (2, 4, 16, 16), out_id.shape
    assert jnp.allclose(out_id, ref_id, atol=5e-2, rtol=5e-2), \
        float(jnp.max(jnp.abs(out_id - ref_id)))

    print("KERNEL_OK")
</pallas_src>

<mosaic_0001>
module attributes {stable_mosaic.version = 11 : i64} {
  func.func @matmul_stats_kernel(%arg0: i32, %arg1: memref<128x128xbf16, #tpu.memory_space<vmem>>, %arg2: memref<128x128xbf16, #tpu.memory_space<vmem>>, %arg3: memref<128x128xbf16, #tpu.memory_space<vmem>>, %arg4: memref<8x128xf32, #tpu.memory_space<vmem>>) attributes {dimension_semantics = [#tpu.dimension_semantics<parallel>], iteration_bounds = array<i64: 1>, scalar_prefetch = 0 : i64, scratch_operands = 0 : i64, tpu.core_type = #tpu.core_type<tc>, window_params = [{transform_indices = @transform_0, window_bounds = array<i64: 128, 128>}, {pipeline_mode = #tpu.pipeline_mode<synchronous>, transform_indices = @transform_1, window_bounds = array<i64: 128, 128>}, {transform_indices = @transform_2, window_bounds = array<i64: 128, 128>}, {transform_indices = @transform_3, window_bounds = array<i64: 8, 128>}]} {
    %c0 = arith.constant 0 : index
    %c0_0 = arith.constant 0 : index
    %0 = vector.load %arg1[%c0, %c0_0] : memref<128x128xbf16, #tpu.memory_space<vmem>>, vector<128x128xbf16>
    %c0_1 = arith.constant 0 : index
    %c0_2 = arith.constant 0 : index
    %1 = vector.load %arg2[%c0_1, %c0_2] : memref<128x128xbf16, #tpu.memory_space<vmem>>, vector<128x128xbf16>
    %cst = arith.constant dense<0.000000e+00> : vector<128x128xf32>
    %2 = tpu.matmul %0, %1, %cst {dimension_numbers = #tpu.dot_dimension_numbers<[1], [0], [0], [1], [0, 0, 1, 1], [], []>} : vector<128x128xbf16>, vector<128x128xbf16>, vector<128x128xf32> -> vector<128x128xf32>
    %cst_3 = arith.constant 0.000000e+00 : f32
    %3 = vector.broadcast %cst_3 : f32 to vector<1x128xf32>
    %cst_4 = arith.constant 0.000000e+00 : f32
    %4 = vector.broadcast %cst_4 : f32 to vector<1x128xf32>
    %cst_5 = arith.constant dense<0.000000e+00> : vector<128xf32>
    %5 = vector.multi_reduction <add>, %2, %cst_5 [0] : vector<128x128xf32> to vector<128xf32>
    %6 = vector.shape_cast %5 : vector<128xf32> to vector<1x128xf32>
    %7 = arith.addf %3, %6 : vector<1x128xf32>
    %8 = arith.mulf %2, %2 : vector<128x128xf32>
    %cst_6 = arith.constant dense<0.000000e+00> : vector<128xf32>
    %9 = vector.multi_reduction <add>, %8, %cst_6 [0] : vector<128x128xf32> to vector<128xf32>
    %10 = vector.shape_cast %9 : vector<128xf32> to vector<1x128xf32>
    %11 = arith.addf %4, %10 : vector<1x128xf32>
    %12 = arith.truncf %2 : vector<128x128xf32> to vector<128x128xbf16>
    %c0_7 = arith.constant 0 : index
    %c0_8 = arith.constant 0 : index
    %13 = vector.load %arg3[%c0_7, %c0_8] : memref<128x128xbf16, #tpu.memory_space<vmem>>, vector<128x128xbf16>
    tpu.vector_store %arg3[%c0_7, %c0_8], %12 {strides = array<i32>} : memref<128x128xbf16, #tpu.memory_space<vmem>>, vector<128x128xbf16>,
    %cst_9 = arith.constant 0.000000e+00 : f32
    %14 = vector.broadcast %cst_9 : f32 to vector<6x128xf32>
    %15 = tpu.concatenate %7, %11, %14 in 0 : vector<1x128xf32>, vector<1x128xf32>, vector<6x128xf32> -> vector<8x128xf32>
    %c0_10 = arith.constant 0 : index
    %c0_11 = arith.constant 0 : index
    %16 = vector.load %arg4[%c0_10, %c0_11] : memref<8x128xf32, #tpu.memory_space<vmem>>, vector<8x128xf32>
    tpu.vector_store %arg4[%c0_10, %c0_11], %15 {strides = array<i32>} : memref<8x128xf32, #tpu.memory_space<vmem>>, vector<8x128xf32>,
    return
  }
  func.func @transform_0(%arg0: i32) -> (i32, i32) {
    %c0_i32 = arith.constant 0 : i32
    %c0_i32_0 = arith.constant 0 : i32
    return %arg0, %c0_i32 : i32, i32
  }
  func.func @transform_1(%arg0: i32) -> (i32, i32) {
    %c0_i32 = arith.constant 0 : i32
    %c0_i32_0 = arith.constant 0 : i32
    %c0_i32_1 = arith.constant 0 : i32
    return %c0_i32, %c0_i32_0 : i32, i32
  }
  func.func @transform_2(%arg0: i32) -> (i32, i32) {
    %c0_i32 = arith.constant 0 : i32
    %c0_i32_0 = arith.constant 0 : i32
    return %arg0, %c0_i32 : i32, i32
  }
  func.func @transform_3(%arg0: i32) -> (i32, i32) {
    %c0_i32 = arith.constant 0 : i32
    %c0_i32_0 = arith.constant 0 : i32
    return %arg0, %c0_i32 : i32, i32
  }
}

module attributes {stable_mosaic.version = 11 : i64} {
  func.func @bn_relu_kernel(%arg0: i32, %arg1: memref<128x128xbf16, #tpu.memory_space<vmem>>, %arg2: memref<1x128xf32, #tpu.memory_space<vmem>>, %arg3: memref<1x128xf32, #tpu.memory_space<vmem>>, %arg4: memref<128x128xbf16, #tpu.memory_space<vmem>>) attributes {dimension_semantics = [#tpu.dimension_semantics<parallel>], iteration_bounds = array<i64: 1>, scalar_prefetch = 0 : i64, scratch_operands = 0 : i64, tpu.core_type = #tpu.core_type<tc>, window_params = [{transform_indices = @transform_0, window_bounds = array<i64: 128, 128>}, {pipeline_mode = #tpu.pipeline_mode<synchronous>, transform_indices = @transform_1, window_bounds = array<i64: 1, 128>}, {pipeline_mode = #tpu.pipeline_mode<synchronous>, transform_indices = @transform_2, window_bounds = array<i64: 1, 128>}, {transform_indices = @transform_3, window_bounds = array<i64: 128, 128>}]} {
    %c0 = arith.constant 0 : index
    %c0_0 = arith.constant 0 : index
    %0 = vector.load %arg1[%c0, %c0_0] : memref<128x128xbf16, #tpu.memory_space<vmem>>, vector<128x128xbf16>
    %1 = arith.extf %0 : vector<128x128xbf16> to vector<128x128xf32>
    %c0_1 = arith.constant 0 : index
    %c0_2 = arith.constant 0 : index
    %2 = vector.load %arg2[%c0_1, %c0_2] : memref<1x128xf32, #tpu.memory_space<vmem>>, vector<1x128xf32>
    %3 = vector.broadcast %2 : vector<1x128xf32> to vector<128x128xf32>
    %4 = arith.mulf %1, %3 : vector<128x128xf32>
    %c0_3 = arith.constant 0 : index
    %c0_4 = arith.constant 0 : index
    %5 = vector.load %arg3[%c0_3, %c0_4] : memref<1x128xf32, #tpu.memory_space<vmem>>, vector<1x128xf32>
    %6 = vector.broadcast %5 : vector<1x128xf32> to vector<128x128xf32>
    %7 = arith.addf %4, %6 : vector<128x128xf32>
    %cst = arith.constant 0.000000e+00 : f32
    %8 = vector.broadcast %cst : f32 to vector<128x128xf32>
    %9 = arith.maximumf %7, %8 : vector<128x128xf32>
    %10 = arith.truncf %9 : vector<128x128xf32> to vector<128x128xbf16>
    %c0_5 = arith.constant 0 : index
    %c0_6 = arith.constant 0 : index
    %11 = vector.load %arg4[%c0_5, %c0_6] : memref<128x128xbf16, #tpu.memory_space<vmem>>, vector<128x128xbf16>
    tpu.vector_store %arg4[%c0_5, %c0_6], %10 {strides = array<i32>} : memref<128x128xbf16, #tpu.memory_space<vmem>>, vector<128x128xbf16>,
    return
  }
  func.func @transform_0(%arg0: i32) -> (i32, i32) {
    %c0_i32 = arith.constant 0 : i32
    %c0_i32_0 = arith.constant 0 : i32
    return %arg0, %c0_i32 : i32, i32
  }
  func.func @transform_1(%arg0: i32) -> (i32, i32) {
    %c0_i32 = arith.constant 0 : i32
    %c0_i32_0 = arith.constant 0 : i32
    %c0_i32_1 = arith.constant 0 : i32
    return %c0_i32, %c0_i32_0 : i32, i32
  }
  func.func @transform_2(%arg0: i32) -> (i32, i32) {
    %c0_i32 = arith.constant 0 : i32
    %c0_i32_0 = arith.constant 0 : i32
    %c0_i32_1 = arith.constant 0 : i32
    return %c0_i32, %c0_i32_0 : i32, i32
  }
  func.func @transform_3(%arg0: i32) -> (i32, i32) {
    %c0_i32 = arith.constant 0 : i32
    %c0_i32_0 = arith.constant 0 : i32
    return %arg0, %c0_i32 : i32, i32
  }
}

module attributes {stable_mosaic.version = 11 : i64} {
  func.func @matmul2_stats_kernel(%arg0: i32, %arg1: memref<128x128xbf16, #tpu.memory_space<vmem>>, %arg2: memref<128x128xbf16, #tpu.memory_space<vmem>>, %arg3: memref<128x128xbf16, #tpu.memory_space<vmem>>, %arg4: memref<128x128xbf16, #tpu.memory_space<vmem>>, %arg5: memref<128x256xbf16, #tpu.memory_space<vmem>>, %arg6: memref<8x256xf32, #tpu.memory_space<vmem>>) attributes {dimension_semantics = [#tpu.dimension_semantics<parallel>], iteration_bounds = array<i64: 1>, scalar_prefetch = 0 : i64, scratch_operands = 0 : i64, tpu.core_type = #tpu.core_type<tc>, window_params = [{transform_indices = @transform_0, window_bounds = array<i64: 128, 128>}, {transform_indices = @transform_1, window_bounds = array<i64: 128, 128>}, {pipeline_mode = #tpu.pipeline_mode<synchronous>, transform_indices = @transform_2, window_bounds = array<i64: 128, 128>}, {pipeline_mode = #tpu.pipeline_mode<synchronous>, transform_indices = @transform_3, window_bounds = array<i64: 128, 128>}, {transform_indices = @transform_4, window_bounds = array<i64: 128, 256>}, {transform_indices = @transform_5, window_bounds = array<i64: 8, 256>}]} {
    %c0 = arith.constant 0 : index
    %c0_0 = arith.constant 0 : index
    %0 = vector.load %arg1[%c0, %c0_0] : memref<128x128xbf16, #tpu.memory_space<vmem>>, vector<128x128xbf16>
    %c0_1 = arith.constant 0 : index
    %c0_2 = arith.constant 0 : index
    %1 = vector.load %arg3[%c0_1, %c0_2] : memref<128x128xbf16, #tpu.memory_space<vmem>>, vector<128x128xbf16>
    %cst = arith.constant dense<0.000000e+00> : vector<128x128xf32>
    %2 = tpu.matmul %0, %1, %cst {dimension_numbers = #tpu.dot_dimension_numbers<[1], [0], [0], [1], [0, 0, 1, 1], [], []>} : vector<128x128xbf16>, vector<128x128xbf16>, vector<128x128xf32> -> vector<128x128xf32>
    %c0_3 = arith.constant 0 : index
    %c0_4 = arith.constant 0 : index
    %3 = vector.load %arg2[%c0_3, %c0_4] : memref<128x128xbf16, #tpu.memory_space<vmem>>, vector<128x128xbf16>
    %c0_5 = arith.constant 0 : index
    %c0_6 = arith.constant 0 : index
    %4 = vector.load %arg4[%c0_5, %c0_6] : memref<128x128xbf16, #tpu.memory_space<vmem>>, vector<128x128xbf16>
    %cst_7 = arith.constant dense<0.000000e+00> : vector<128x128xf32>
    %5 = tpu.matmul %3, %4, %cst_7 {dimension_numbers = #tpu.dot_dimension_numbers<[1], [0], [0], [1], [0, 0, 1, 1], [], []>} : vector<128x128xbf16>, vector<128x128xbf16>, vector<128x128xf32> -> vector<128x128xf32>
    %cst_8 = arith.constant 0.000000e+00 : f32
    %6 = vector.broadcast %cst_8 : f32 to vector<1x128xf32>
    %cst_9 = arith.constant 0.000000e+00 : f32
    %7 = vector.broadcast %cst_9 : f32 to vector<1x128xf32>
    %cst_10 = arith.constant dense<0.000000e+00> : vector<128xf32>
    %8 = vector.multi_reduction <add>, %2, %cst_10 [0] : vector<128x128xf32> to vector<128xf32>
    %9 = vector.shape_cast %8 : vector<128xf32> to vector<1x128xf32>
    %10 = arith.addf %6, %9 : vector<1x128xf32>
    %11 = arith.mulf %2, %2 : vector<128x128xf32>
    %cst_11 = arith.constant dense<0.000000e+00> : vector<128xf32>
    %12 = vector.multi_reduction <add>, %11, %cst_11 [0] : vector<128x128xf32> to vector<128xf32>
    %13 = vector.shape_cast %12 : vector<128xf32> to vector<1x128xf32>
    %14 = arith.addf %7, %13 : vector<1x128xf32>
    %cst_12 = arith.constant 0.000000e+00 : f32
    %15 = vector.broadcast %cst_12 : f32 to vector<1x128xf32>
    %cst_13 = arith.constant 0.000000e+00 : f32
    %16 = vector.broadcast %cst_13 : f32 to vector<1x128xf32>
    %cst_14 = arith.constant dense<0.000000e+00> : vector<128xf32>
    %17 = vector.multi_reduction <add>, %5, %cst_14 [0] : vector<128x128xf32> to vector<128xf32>
    %18 = vector.shape_cast %17 : vector<128xf32> to vector<1x128xf32>
    %19 = arith.addf %15, %18 : vector<1x128xf32>
    %20 = arith.mulf %5, %5 : vector<128x128xf32>
    %cst_15 = arith.constant dense<0.000000e+00> : vector<128xf32>
    %21 = vector.multi_reduction <add>, %20, %cst_15 [0] : vector<128x128xf32> to vector<128xf32>
    %22 = vector.shape_cast %21 : vector<128xf32> to vector<1x128xf32>
    %23 = arith.addf %16, %22 : vector<1x128xf32>
    %24 = arith.truncf %2 : vector<128x128xf32> to vector<128x128xbf16>
    %c0_16 = arith.constant 0 : index
    %c0_17 = arith.constant 0 : index
    %25 = vector.load %arg5[%c0_16, %c0_17] : memref<128x256xbf16, #tpu.memory_space<vmem>>, vector<128x128xbf16>
    tpu.vector_store %arg5[%c0_16, %c0_17], %24 {strides = array<i32>} : memref<128x256xbf16, #tpu.memory_space<vmem>>, vector<128x128xbf16>,
    %26 = arith.truncf %5 : vector<128x128xf32> to vector<128x128xbf16>
    %c0_18 = arith.constant 0 : index
    %c128 = arith.constant 128 : index
    %27 = vector.load %arg5[%c0_18, %c128] : memref<128x256xbf16, #tpu.memory_space<vmem>>, vector<128x128xbf16>
    tpu.vector_store %arg5[%c0_18, %c128], %26 {strides = array<i32>} : memref<128x256xbf16, #tpu.memory_space<vmem>>, vector<128x128xbf16>,
    %cst_19 = arith.constant 0.000000e+00 : f32
    %28 = vector.broadcast %cst_19 : f32 to vector<6x256xf32>
    %29 = tpu.concatenate %10, %19 in 1 : vector<1x128xf32>, vector<1x128xf32> -> vector<1x256xf32>
    %30 = tpu.concatenate %14, %23 in 1 : vector<1x128xf32>, vector<1x128xf32> -> vector<1x256xf32>
    %31 = tpu.concatenate %29, %30, %28 in 0 : vector<1x256xf32>, vector<1x256xf32>, vector<6x256xf32> -> vector<8x256xf32>
    %c0_20 = arith.constant 0 : index
    %c0_21 = arith.constant 0 : index
    %32 = vector.load %arg6[%c0_20, %c0_21] : memref<8x256xf32, #tpu.memory_space<vmem>>, vector<8x256xf32>
    tpu.vector_store %arg6[%c0_20, %c0_21], %31 {strides = array<i32>} : memref<8x256xf32, #tpu.memory_space<vmem>>, vector<8x256xf32>,
    return
  }
  func.func @transform_0(%arg0: i32) -> (i32, i32) {
    %c0_i32 = arith.constant 0 : i32
    %c0_i32_0 = arith.constant 0 : i32
    return %arg0, %c0_i32 : i32, i32
  }
  func.func @transform_1(%arg0: i32) -> (i32, i32) {
    %c0_i32 = arith.constant 0 : i32
    %c0_i32_0 = arith.constant 0 : i32
    return %arg0, %c0_i32 : i32, i32
  }
  func.func @transform_2(%arg0: i32) -> (i32, i32) {
    %c0_i32 = arith.constant 0 : i32
    %c0_i32_0 = arith.constant 0 : i32
    %c0_i32_1 = arith.constant 0 : i32
    return %c0_i32, %c0_i32_0 : i32, i32
  }
  func.func @transform_3(%arg0: i32) -> (i32, i32) {
    %c0_i32 = arith.constant 0 : i32
    %c0_i32_0 = arith.constant 0 : i32
    %c0_i32_1 = arith.constant 0 : i32
    return %c0_i32, %c0_i32_0 : i32, i32
  }
  func.func @transform_4(%arg0: i32) -> (i32, i32) {
    %c0_i32 = arith.constant 0 : i32
    %c0_i32_0 = arith.constant 0 : i32
    return %arg0, %c0_i32 : i32, i32
  }
  func.func @transform_5(%arg0: i32) -> (i32, i32) {
    %c0_i32 = arith.constant 0 : i32
    %c0_i32_0 = arith.constant 0 : i32
    return %arg0, %c0_i32 : i32, i32
  }
}

module attributes {stable_mosaic.version = 11 : i64} {
  func.func @bn_dual_add_relu_kernel(%arg0: i32, %arg1: memref<128x256xbf16, #tpu.memory_space<vmem>>, %arg2: memref<1x256xf32, #tpu.memory_space<vmem>>, %arg3: memref<1x256xf32, #tpu.memory_space<vmem>>, %arg4: memref<128x128xbf16, #tpu.memory_space<vmem>>) attributes {dimension_semantics = [#tpu.dimension_semantics<parallel>], iteration_bounds = array<i64: 1>, scalar_prefetch = 0 : i64, scratch_operands = 0 : i64, tpu.core_type = #tpu.core_type<tc>, window_params = [{transform_indices = @transform_0, window_bounds = array<i64: 128, 256>}, {pipeline_mode = #tpu.pipeline_mode<synchronous>, transform_indices = @transform_1, window_bounds = array<i64: 1, 256>}, {pipeline_mode = #tpu.pipeline_mode<synchronous>, transform_indices = @transform_2, window_bounds = array<i64: 1, 256>}, {transform_indices = @transform_3, window_bounds = array<i64: 128, 128>}]} {
    %c0 = arith.constant 0 : index
    %c0_0 = arith.constant 0 : index
    %0 = vector.load %arg1[%c0, %c0_0] : memref<128x256xbf16, #tpu.memory_space<vmem>>, vector<128x256xbf16>
    %1 = arith.extf %0 : vector<128x256xbf16> to vector<128x256xf32>
    %c0_1 = arith.constant 0 : index
    %c0_2 = arith.constant 0 : index
    %2 = vector.load %arg2[%c0_1, %c0_2] : memref<1x256xf32, #tpu.memory_space<vmem>>, vector<1x256xf32>
    %3 = vector.broadcast %2 : vector<1x256xf32> to vector<128x256xf32>
    %4 = arith.mulf %1, %3 : vector<128x256xf32>
    %c0_3 = arith.constant 0 : index
    %c0_4 = arith.constant 0 : index
    %5 = vector.load %arg3[%c0_3, %c0_4] : memref<1x256xf32, #tpu.memory_space<vmem>>, vector<1x256xf32>
    %6 = vector.broadcast %5 : vector<1x256xf32> to vector<128x256xf32>
    %7 = arith.addf %4, %6 : vector<128x256xf32>
    %8 = vector.extract_strided_slice %7 {offsets = [0, 0], sizes = [128, 128], strides = [1, 1]} : vector<128x256xf32> to vector<128x128xf32>
    %9 = vector.extract_strided_slice %7 {offsets = [0, 128], sizes = [128, 128], strides = [1, 1]} : vector<128x256xf32> to vector<128x128xf32>
    %10 = arith.addf %8, %9 : vector<128x128xf32>
    %cst = arith.constant 0.000000e+00 : f32
    %11 = vector.broadcast %cst : f32 to vector<128x128xf32>
    %12 = arith.maximumf %10, %11 : vector<128x128xf32>
    %13 = arith.truncf %12 : vector<128x128xf32> to vector<128x128xbf16>
    %c0_5 = arith.constant 0 : index
    %c0_6 = arith.constant 0 : index
    %14 = vector.load %arg4[%c0_5, %c0_6] : memref<128x128xbf16, #tpu.memory_space<vmem>>, vector<128x128xbf16>
    tpu.vector_store %arg4[%c0_5, %c0_6], %13 {strides = array<i32>} : memref<128x128xbf16, #tpu.memory_space<vmem>>, vector<128x128xbf16>,
    return
  }
  func.func @transform_0(%arg0: i32) -> (i32, i32) {
    %c0_i32 = arith.constant 0 : i32
    %c0_i32_0 = arith.constant 0 : i32
    return %arg0, %c0_i32 : i32, i32
  }
  func.func @transform_1(%arg0: i32) -> (i32, i32) {
    %c0_i32 = arith.constant 0 : i32
    %c0_i32_0 = arith.constant 0 : i32
    %c0_i32_1 = arith.constant 0 : i32
    return %c0_i32, %c0_i32_0 : i32, i32
  }
  func.func @transform_2(%arg0: i32) -> (i32, i32) {
    %c0_i32 = arith.constant 0 : i32
    %c0_i32_0 = arith.constant 0 : i32
    %c0_i32_1 = arith.constant 0 : i32
    return %c0_i32, %c0_i32_0 : i32, i32
  }
  func.func @transform_3(%arg0: i32) -> (i32, i32) {
    %c0_i32 = arith.constant 0 : i32
    %c0_i32_0 = arith.constant 0 : i32
    return %arg0, %c0_i32 : i32, i32
  }
}

</mosaic_0001>

<bundles_post_ra>
// kernel: basic_block_forward.5
= control target key start
LH: loop header
LB: loop body
LE: loop exit
PB: predicated region body
PF: predicated region fallthrough
CT: control target
= control target key end

     0   :  { %s336_s0 = inlined_call_operand.vmem [shape: bf16[128,128], index: 0, kind: input, shape index: {}]   ;;  %s337_s1 = inlined_call_operand.vmem [shape: f32[1,128], index: 1, kind: input, shape index: {}]   ;;  %s338_s2 = inlined_call_operand.vmem [shape: f32[1,128], index: 2, kind: input, shape index: {}]   ;;  %s339_s3 = inlined_call_operand.vmem [shape: bf16[128,128], index: 3, kind: output, shape index: {}]  }
   0x1   :  { %v139_v0 = vld [vmem:[%s336_s0] sm:$0xff]   ;;  %v210_v5 = vld [vmem:[%s336_s0 + $0x8] sm:$0xff]   ;;  %v211_v8 = vld [vmem:[%s336_s0 + $0x10] sm:$0xff]  }
   0x2   :  { %v252_v1 = vld [vmem:[%s337_s1] ss:$0 sm:$0xff]  ;;  %v140_v2 = vunpack.c.l.bf16 %v139_v0  ;;  %v141_v3 = vunpack.c.h.bf16 %v139_v0  ;;  %v144_v6 = vunpack.c.l.bf16 %v210_v5  ;;  %v145_v7 = vunpack.c.h.bf16 %v210_v5  ;;  %v212_v9 = vld [vmem:[%s336_s0 + $0x18] sm:$0xff]   ;;  %v214_v35 = vld [vmem:[%s336_s0 + $0x28] sm:$0xff]  }
   0x3   :  { %v257_v4 = vld [vmem:[%s338_s2] ss:$0 sm:$0xff]  ;;  %v148_v12 = vunpack.c.l.bf16 %v211_v8  ;;  %v149_v13 = vunpack.c.h.bf16 %v211_v8  ;;  %v152_v16 = vunpack.c.l.bf16 %v212_v9  ;;  %v153_v17 = vunpack.c.h.bf16 %v212_v9  ;;  %v215_v40 = vld [vmem:[%s336_s0 + $0x30] sm:$0xff]   ;;  %v216_v45 = vld [vmem:[%s336_s0 + $0x38] sm:$0xff]  }
   0x4   :  { %v50_v10 = vmul.f32 %v252_v1, %v140_v2  ;;  %v51_v11 = vmul.f32 %v252_v1, %v141_v3  ;;  %v52_v14 = vmul.f32 %v252_v1, %v144_v6  ;;  %v53_v15 = vmul.f32 %v252_v1, %v145_v7  ;;  %v213_v26 = vld [vmem:[%s336_s0 + $0x20] sm:$0xff]  }
   0x5   :  { %v54_v20 = vmul.f32 %v252_v1, %v148_v12  ;;  %v55_v21 = vmul.f32 %v252_v1, %v149_v13  ;;  %v56_v24 = vmul.f32 %v252_v1, %v152_v16  ;;  %v57_v25 = vmul.f32 %v252_v1, %v153_v17 }
   0x6   :  { %v70_v18 = vadd.f32 %v257_v4, %v50_v10  ;;  %v71_v19 = vadd.f32 %v257_v4, %v51_v11  ;;  %v72_v22 = vadd.f32 %v257_v4, %v52_v14  ;;  %v73_v23 = vadd.f32 %v257_v4, %v53_v15 }
   0x7   :  { %v74_v29 = vadd.f32 %v257_v4, %v54_v20  ;;  %v75_v30 = vadd.f32 %v257_v4, %v55_v21  ;;  %v76_v33 = vadd.f32 %v257_v4, %v56_v24  ;;  %v77_v34 = vadd.f32 %v257_v4, %v57_v25 }
   0x8   :  { %v86_v27 = vmax.f32 %v70_v18, 0.0  ;;  %v87_v28 = vmax.f32 %v71_v19, 0.0  ;;  %v88_v31 = vmax.f32 %v72_v22, 0.0  ;;  %v89_v32 = vmax.f32 %v73_v23, 0.0 }
   0x9   :  { %v90_v37 = vmax.f32 %v74_v29, 0.0  ;;  %v91_v38 = vmax.f32 %v75_v30, 0.0  ;;  %v156_v39 = vunpack.c.l.bf16 %v213_v26  ;;  %v92_v42 = vmax.f32 %v76_v33, 0.0 }
   0xa   :  { %v173_v36 = vpack.c.bf16 %v87_v28, %v86_v27  ;;  %v178_v41 = vpack.c.bf16 %v89_v32, %v88_v31  ;;  %v93_v43 = vmax.f32 %v77_v34, 0.0  ;;  %v157_v44 = vunpack.c.h.bf16 %v213_v26 }
   0xb   :  { %v183_v46 = vpack.c.bf16 %v91_v38, %v90_v37  ;;  %v58_v47 = vmul.f32 %v252_v1, %v156_v39  ;;  %v160_v48 = vunpack.c.l.bf16 %v214_v35  ;;  %v161_v49 = vunpack.c.h.bf16 %v214_v35 }
   0xc   :  { %174 = vst [vmem:[%s339_s3] sm:$0xff] %v173_v36   ;;  %v188_v50 = vpack.c.bf16 %v93_v43, %v92_v42  ;;  %v59_v51 = vmul.f32 %v252_v1, %v157_v44  ;;  %v164_v52 = vunpack.c.l.bf16 %v215_v40  ;;  %v165_v53 = vunpack.c.h.bf16 %v215_v40 }
   0xd   :  { %217 = vst [vmem:[%s339_s3 + $0x8] sm:$0xff] %v178_v41   ;;  %v78_v54 = vadd.f32 %v257_v4, %v58_v47  ;;  %v60_v55 = vmul.f32 %v252_v1, %v160_v48  ;;  %v61_v56 = vmul.f32 %v252_v1, %v161_v49  ;;  %v168_v57 = vunpack.c.l.bf16 %v216_v45 }
   0xe   :  { %218 = vst [vmem:[%s339_s3 + $0x10] sm:$0xff] %v183_v46   ;;  %v79_v58 = vadd.f32 %v257_v4, %v59_v51  ;;  %v62_v59 = vmul.f32 %v252_v1, %v164_v52  ;;  %v63_v60 = vmul.f32 %v252_v1, %v165_v53  ;;  %v169_v61 = vunpack.c.h.bf16 %v216_v45 }
   0xf   :  { %219 = vst [vmem:[%s339_s3 + $0x18] sm:$0xff] %v188_v50   ;;  %v94_v62 = vmax.f32 %v78_v54, 0.0  ;;  %v80_v63 = vadd.f32 %v257_v4, %v60_v55  ;;  %v81_v0 = vadd.f32 %v257_v4, %v61_v56  ;;  %v64_v2 = vmul.f32 %v252_v1, %v168_v57 }
  0x10   :  { %v95_v3 = vmax.f32 %v79_v58, 0.0  ;;  %v82_v5 = vadd.f32 %v257_v4, %v62_v59  ;;  %v83_v6 = vadd.f32 %v257_v4, %v63_v60  ;;  %v65_v7 = vmul.f32 %v252_v1, %v169_v61 }
  0x11   :  { %v96_v8 = vmax.f32 %v80_v63, 0.0  ;;  %v97_v9 = vmax.f32 %v81_v0, 0.0  ;;  %v84_v10 = vadd.f32 %v257_v4, %v64_v2 }
  0x12   :  { %v193_v11 = vpack.c.bf16 %v95_v3, %v94_v62  ;;  %v98_v12 = vmax.f32 %v82_v5, 0.0  ;;  %v99_v13 = vmax.f32 %v83_v6, 0.0  ;;  %v85_v14 = vadd.f32 %v257_v4, %v65_v7 }
  0x13   :  { %v198_v15 = vpack.c.bf16 %v97_v9, %v96_v8  ;;  %v100_v16 = vmax.f32 %v84_v10, 0.0 }
  0x14   :  { %220 = vst [vmem:[%s339_s3 + $0x20] sm:$0xff] %v193_v11   ;;  %v203_v17 = vpack.c.bf16 %v99_v13, %v98_v12  ;;  %v101_v18 = vmax.f32 %v85_v14, 0.0 }
  0x15   :  { %221 = vst [vmem:[%s339_s3 + $0x28] sm:$0xff] %v198_v15  }
  0x16   :  { %222 = vst [vmem:[%s339_s3 + $0x30] sm:$0xff] %v203_v17   ;;  %v208_v1 = vpack.c.bf16 %v101_v18, %v100_v16 }
  0x18   :  { %223 = vst [vmem:[%s339_s3 + $0x38] sm:$0xff] %v208_v1  }

// kernel: basic_block_forward.4
= control target key start
LH: loop header
LB: loop body
LE: loop exit
PB: predicated region body
PF: predicated region fallthrough
CT: control target
= control target key end

     0   :  { %vm282_vm0 = vcmask 1040384   ;;  %vm284_vm1 = vcmask 1041408   ;;  %s547_s1 = inlined_call_operand.vmem [shape: bf16[128,128], index: 1, kind: input, shape index: {}]   ;;  %s548_s0 = inlined_call_operand.vmem [shape: bf16[128,128], index: 0, kind: input, shape index: {}]   ;;  %s549_s2 = inlined_call_operand.vmem [shape: bf16[128,128], index: 2, kind: output, shape index: {0}]   ;;  %s550_s3 = inlined_call_operand.vmem [shape: f32[8,128], index: 3, kind: output, shape index: {1}]  }
   0x1   :  { %v374_v0 = vld [vmem:[%s547_s1 + $0x38] sm:$0xff]  ;;  %v373_v1 = vld [vmem:[%s547_s1 + $0x30] sm:$0xff]  ;;  %v372_v2 = vld [vmem:[%s547_s1 + $0x28] sm:$0xff] }
   0x2   :  { %141 = vmatpush.bf16.msra.mxu0 %v374_v0  ;;  %422 = vmatpush.bf16.msra.mxu1 %v374_v0  ;;  %v371_v3 = vld [vmem:[%s547_s1 + $0x20] sm:$0xff]  ;;  %v370_v4 = vld [vmem:[%s547_s1 + $0x18] sm:$0xff]  ;;  %v369_v5 = vld [vmem:[%s547_s1 + $0x10] sm:$0xff] }
   0x3   :  { %423 = vmatpush.bf16.msra.mxu2 %v374_v0  ;;  %424 = vmatpush.bf16.msra.mxu3 %v374_v0  ;;  %v368_v6 = vld [vmem:[%s547_s1 + $0x8] sm:$0xff]  ;;  %v367_v7 = vld [vmem:[%s547_s1] sm:$0xff]  ;;  %v361_v9 = vld [vmem:[%s548_s0 + $0x10] sm:$0xff] }
   0x4   :  { %v359_v8 = vld [vmem:[%s548_s0] sm:$0xff]  ;;  %v365_v11 = vld [vmem:[%s548_s0 + $0x30] sm:$0xff]  ;;  %v360_v12 = vld [vmem:[%s548_s0 + $0x8] sm:$0xff] }
   0x5   :  { %v363_v10 = vld [vmem:[%s548_s0 + $0x20] sm:$0xff]  ;;  %v362_v13 = vld [vmem:[%s548_s0 + $0x18] sm:$0xff]  ;;  %v364_v14 = vld [vmem:[%s548_s0 + $0x28] sm:$0xff] }
   0x6   :  { %142 = vmatpush.bf16.msra.mxu0 %v373_v1  ;;  %425 = vmatpush.bf16.msra.mxu1 %v373_v1  ;;  %v366_v15 = vld [vmem:[%s548_s0 + $0x38] sm:$0xff] }
   0x7   :  { %426 = vmatpush.bf16.msra.mxu2 %v373_v1  ;;  %427 = vmatpush.bf16.msra.mxu3 %v373_v1 }
   0xa   :  { %143 = vmatpush.bf16.msra.mxu0 %v372_v2  ;;  %428 = vmatpush.bf16.msra.mxu1 %v372_v2 }
   0xb   :  { %429 = vmatpush.bf16.msra.mxu2 %v372_v2  ;;  %430 = vmatpush.bf16.msra.mxu3 %v372_v2 }
   0xe   :  { %144 = vmatpush.bf16.msra.mxu0 %v371_v3  ;;  %431 = vmatpush.bf16.msra.mxu1 %v371_v3 }
   0xf   :  { %432 = vmatpush.bf16.msra.mxu2 %v371_v3  ;;  %433 = vmatpush.bf16.msra.mxu3 %v371_v3 }
  0x12   :  { %145 = vmatpush.bf16.msra.mxu0 %v370_v4  ;;  %434 = vmatpush.bf16.msra.mxu1 %v370_v4 }
  0x13   :  { %435 = vmatpush.bf16.msra.mxu2 %v370_v4  ;;  %436 = vmatpush.bf16.msra.mxu3 %v370_v4 }
  0x16   :  { %146 = vmatpush.bf16.msra.mxu0 %v369_v5  ;;  %437 = vmatpush.bf16.msra.mxu1 %v369_v5 }
  0x17   :  { %438 = vmatpush.bf16.msra.mxu2 %v369_v5  ;;  %439 = vmatpush.bf16.msra.mxu3 %v369_v5 }
  0x1a   :  { %147 = vmatpush.bf16.msra.mxu0 %v368_v6  ;;  %440 = vmatpush.bf16.msra.mxu1 %v368_v6 }
  0x1b   :  { %441 = vmatpush.bf16.msra.mxu2 %v368_v6  ;;  %442 = vmatpush.bf16.msra.mxu3 %v368_v6 }
  0x1e   :  { %148 = vmatpush.bf16.msra.mxu0 %v367_v7  ;;  %443 = vmatpush.bf16.msra.mxu1 %v367_v7 }
  0x1f   :  { %444 = vmatpush.bf16.msra.mxu2 %v367_v7  ;;  %445 = vmatpush.bf16.msra.mxu3 %v367_v7 }
  0x21   :  { %149 = vmatmul.bf16.vlgmr.msra.gmra.mxu0 %v359_v8  ;;  %159 = vmatmul.bf16.vlgmr.msra.gmra.mxu1 %v361_v9 }
  0x22   :  { %169 = vmatmul.bf16.vlgmr.msra.gmra.mxu2 %v363_v10  ;;  %179 = vmatmul.bf16.vlgmr.msra.gmra.mxu3 %v365_v11 }
  0x31   :  { %154 = vmatmul.bf16.gmra.mxu0 %v360_v12  ;;  %164 = vmatmul.bf16.gmra.mxu1 %v362_v13 }
  0x32   :  { %174 = vmatmul.bf16.gmra.mxu2 %v364_v14  ;;  %184 = vmatmul.bf16.gmra.mxu3 %v366_v15 }
  0x9e   :  { %v150_v16 = vpop.f32.mrf.mxu0  ;;  %v160_v17 = vpop.f32.mrf.mxu1 }
  0x9f   :  { %v212_v31 = vmul.f32 %v150_v16, %v150_v16  ;;  %v216_v45 = vmul.f32 %v160_v17, %v160_v17 }
  0xa5   :  { %v170_v18 = vpop.f32.mrf.mxu2  ;;  %v514_v19 = vpop.f32.mrf.mxu3 }
  0xa6   :  { %v152_v20 = vpop.f32.mrf.mxu0  ;;  %v162_v21 = vpop.f32.mrf.mxu1  ;;  %v220_v61 = vmul.f32 %v170_v18, %v170_v18  ;;  %v224_v9 = vmul.f32 %v514_v19, %v514_v19 }
  0xa7   :  { %v378_v22 = vpack.c.bf16 %v152_v20, %v150_v16  ;;  %v388_v23 = vpack.c.bf16 %v162_v21, %v160_v17  ;;  %v213_v30 = vmul.f32 %v152_v20, %v152_v20  ;;  %v190_v32 = vadd.f32 %v152_v20, %v150_v16 }
  0xa8   :  { %v217_v48 = vmul.f32 %v162_v21, %v162_v21 }
  0xa9   :  { %379 = vst [vmem:[%s549_s2] sm:$0xff] %v378_v22   ;;  %v228_v34 = vadd.f32 %v213_v30, %v212_v31 }
  0xaa   :  { %416 = vst [vmem:[%s549_s2 + $0x10] sm:$0xff] %v388_v23  }
  0xad   :  { %v172_v24 = vpop.f32.mrf.mxu2  ;;  %v182_v25 = vpop.f32.mrf.mxu3 }
  0xae   :  { %v155_v26 = vpop.f32.mrf.mxu0  ;;  %v165_v27 = vpop.f32.mrf.mxu1  ;;  %v398_v28 = vpack.c.bf16 %v172_v24, %v170_v18  ;;  %v408_v29 = vpack.c.bf16 %v182_v25, %v514_v19  ;;  %v221_v0 = vmul.f32 %v172_v24, %v172_v24  ;;  %v225_v12 = vmul.f32 %v182_v25, %v182_v25 }
  0xaf   :  { %v214_v33 = vmul.f32 %v155_v26, %v155_v26  ;;  %v191_v35 = vadd.f32 %v190_v32, %v155_v26  ;;  %v218_v51 = vmul.f32 %v165_v27, %v165_v27 }
  0xb0   :  { %418 = vst [vmem:[%s549_s2 + $0x20] sm:$0xff] %v398_v28  }
  0xb1   :  { %420 = vst [vmem:[%s549_s2 + $0x30] sm:$0xff] %v408_v29   ;;  %v229_v40 = vadd.f32 %v228_v34, %v214_v33 }
  0xb5   :  { %v175_v36 = vpop.f32.mrf.mxu2  ;;  %v185_v37 = vpop.f32.mrf.mxu3 }
  0xb6   :  { %v157_v38 = vpop.f32.mrf.mxu0  ;;  %v167_v39 = vpop.f32.mrf.mxu1  ;;  %v222_v4 = vmul.f32 %v175_v36, %v175_v36  ;;  %v226_v16 = vmul.f32 %v185_v37, %v185_v37 }
  0xb7   :  { %v192_v41 = vadd.f32 %v191_v35, %v157_v38  ;;  %v215_v42 = vmul.f32 %v157_v38, %v157_v38  ;;  %v383_v43 = vpack.c.bf16 %v157_v38, %v155_v26  ;;  %v393_v44 = vpack.c.bf16 %v167_v39, %v165_v27 }
  0xb8   :  { %v219_v59 = vmul.f32 %v167_v39, %v167_v39 }
  0xb9   :  { %v193_v46 = vadd.f32 %v192_v41, %v160_v17  ;;  %v230_v47 = vadd.f32 %v229_v40, %v215_v42  ;;  %415 = vst [vmem:[%s549_s2 + $0x8] sm:$0xff] %v383_v43  }
  0xba   :  { %417 = vst [vmem:[%s549_s2 + $0x18] sm:$0xff] %v393_v44  }
  0xbb   :  { %v231_v49 = vadd.f32 %v230_v47, %v216_v45  ;;  %v194_v50 = vadd.f32 %v193_v46, %v162_v21 }
  0xbd   :  { %v195_v52 = vadd.f32 %v194_v50, %v165_v27  ;;  %v232_v53 = vadd.f32 %v231_v49, %v217_v48  ;;  %v177_v54 = vpop.f32.mrf.mxu2  ;;  %v187_v55 = vpop.f32.mrf.mxu3 }
  0xbe   :  { %v403_v56 = vpack.c.bf16 %v177_v54, %v175_v36  ;;  %v413_v57 = vpack.c.bf16 %v187_v55, %v185_v37  ;;  %v223_v8 = vmul.f32 %v177_v54, %v177_v54  ;;  %v227_v21 = vmul.f32 %v187_v55, %v187_v55 }
  0xbf   :  { %v196_v58 = vadd.f32 %v195_v52, %v167_v39  ;;  %v233_v60 = vadd.f32 %v232_v53, %v218_v51 }
  0xc0   :  { %419 = vst [vmem:[%s549_s2 + $0x28] sm:$0xff] %v403_v56  }
  0xc1   :  { %v197_v62 = vadd.f32 %v196_v58, %v170_v18  ;;  %v234_v63 = vadd.f32 %v233_v60, %v219_v59  ;;  %421 = vst [vmem:[%s549_s2 + $0x38] sm:$0xff] %v413_v57  }
  0xc3   :  { %v235_v1 = vadd.f32 %v234_v63, %v220_v61  ;;  %v198_v2 = vadd.f32 %v197_v62, %v172_v24 }
  0xc5   :  { %v199_v3 = vadd.f32 %v198_v2, %v175_v36  ;;  %v236_v5 = vadd.f32 %v235_v1, %v221_v0 }
  0xc7   :  { %v237_v6 = vadd.f32 %v236_v5, %v222_v4  ;;  %v200_v7 = vadd.f32 %v199_v3, %v177_v54 }
  0xc9   :  { %v201_v10 = vadd.f32 %v200_v7, %v514_v19  ;;  %v238_v11 = vadd.f32 %v237_v6, %v223_v8 }
  0xcb   :  { %v239_v13 = vadd.f32 %v238_v11, %v224_v9  ;;  %v202_v14 = vadd.f32 %v201_v10, %v182_v25 }
  0xcd   :  { %v203_v15 = vadd.f32 %v202_v14, %v185_v37  ;;  %v240_v17 = vadd.f32 %v239_v13, %v225_v12 }
  0xcf   :  { %v241_v18 = vadd.f32 %v240_v17, %v226_v16  ;;  %v204_v20 = vadd.f32 %v203_v15, %v187_v55 }
  0xd1   :  { %v205_v22 = vrot.slane %v204_v20, 4  ;;  %v242_v23 = vadd.f32 %v241_v18, %v227_v21 }
  0xd3   :  { %v206_v24 = vadd.f32 %v205_v22, %v204_v20  ;;  %v243_v26 = vrot.slane %v242_v23, 4 }
  0xd5   :  { %v207_v27 = vrot.slane %v206_v24, 2  ;;  %v244_v28 = vadd.f32 %v243_v26, %v242_v23 }
  0xd7   :  { %v208_v29 = vadd.f32 %v207_v27, %v206_v24  ;;  %v245_v30 = vrot.slane %v244_v28, 2 }
  0xd9   :  { %v209_v31 = vrot.slane %v208_v29, 1  ;;  %v246_v19 = vadd.f32 %v245_v30, %v244_v28 }
  0xdb   :  { %v247_v32 = vrot.slane %v246_v19, 1  ;;  %v210_v33 = vadd.f32 %v209_v31, %v208_v29 }
  0xdd   :  { %v248_v25 = vadd.f32 %v247_v32, %v246_v19 }
  0xdf   :  { %v283_v34 = vsel %vm282_vm0, %v210_v33, %v248_v25 }
  0xe0   :  { %v285_v35 = vsel %vm284_vm1, %v283_v34, 0.0 }
  0xe1   :  { %286 = vst [vmem:[%s550_s3] sm:$0xff] %v285_v35 }

// kernel: basic_block_forward.7
= control target key start
LH: loop header
LB: loop body
LE: loop exit
PB: predicated region body
PF: predicated region fallthrough
CT: control target
= control target key end

     0   :  { %s423_s0 = inlined_call_operand.vmem [shape: bf16[128,256], index: 0, kind: input, shape index: {}]   ;;  %s424_s1 = inlined_call_operand.vmem [shape: f32[1,256], index: 1, kind: input, shape index: {}]   ;;  %s425_s2 = inlined_call_operand.vmem [shape: f32[1,256], index: 2, kind: input, shape index: {}]   ;;  %s426_s3 = inlined_call_operand.vmem [shape: bf16[128,128], index: 3, kind: output, shape index: {}]  }
   0x1   :  { %v14_v0 = vld [vmem:[%s423_s0] sm:$0xff]  ;;  %v15_v1 = vld [vmem:[%s423_s0 + $0x8] sm:$0xff]  ;;  %v16_v8 = vld [vmem:[%s423_s0 + $0x10] sm:$0xff] }
   0x2   :  { %v62_v2 = vld [vmem:[%s424_s1] sm:$0x3]  ;;  %v30_v3 = vunpack.c.l.bf16 %v14_v0  ;;  %v31_v4 = vunpack.c.h.bf16 %v14_v0  ;;  %v32_v5 = vunpack.c.l.bf16 %v15_v1  ;;  %v33_v6 = vunpack.c.h.bf16 %v15_v1  ;;  %v17_v9 = vld [vmem:[%s423_s0 + $0x18] sm:$0xff]  ;;  %v19_v31 = vld [vmem:[%s423_s0 + $0x28] sm:$0xff] }
   0x3   :  { %v100_v7 = vld [vmem:[%s425_s2] sm:$0x3]  ;;  %v291_v10 = vperm.slane %v62_v2, 0  ;;  %v293_v11 = vperm.slane %v62_v2, 1  ;;  %v34_v14 = vunpack.c.l.bf16 %v16_v8  ;;  %v35_v15 = vunpack.c.h.bf16 %v16_v8  ;;  %v20_v44 = vld [vmem:[%s423_s0 + $0x30] sm:$0xff]  ;;  %v21_v53 = vld [vmem:[%s423_s0 + $0x38] sm:$0xff] }
   0x4   :  { %v295_v12 = vperm.slane %v100_v7, 0  ;;  %v297_v13 = vperm.slane %v100_v7, 1  ;;  %v36_v16 = vunpack.c.l.bf16 %v17_v9  ;;  %v37_v17 = vunpack.c.h.bf16 %v17_v9  ;;  %v18_v26 = vld [vmem:[%s423_s0 + $0x20] sm:$0xff] }
   0x5   :  { %v68_v18 = vmul.f32 %v291_v10, %v30_v3  ;;  %v69_v19 = vmul.f32 %v293_v11, %v31_v4  ;;  %v70_v20 = vmul.f32 %v291_v10, %v32_v5  ;;  %v71_v21 = vmul.f32 %v293_v11, %v33_v6  ;;  %v22_v58 = vld [vmem:[%s423_s0 + $0x40] sm:$0xff]  ;;  %v23_v3 = vld [vmem:[%s423_s0 + $0x48] sm:$0xff] }
   0x6   :  { %v72_v22 = vmul.f32 %v291_v10, %v34_v14  ;;  %v73_v23 = vmul.f32 %v293_v11, %v35_v15  ;;  %v74_v24 = vmul.f32 %v291_v10, %v36_v16  ;;  %v75_v25 = vmul.f32 %v293_v11, %v37_v17 }
   0x7   :  { %v106_v27 = vadd.f32 %v295_v12, %v68_v18  ;;  %v107_v28 = vadd.f32 %v297_v13, %v69_v19  ;;  %v108_v29 = vadd.f32 %v295_v12, %v70_v20  ;;  %v109_v30 = vadd.f32 %v297_v13, %v71_v21  ;;  %v24_v20 = vld [vmem:[%s423_s0 + $0x50] sm:$0xff] }
   0x8   :  { %v110_v32 = vadd.f32 %v295_v12, %v72_v22  ;;  %v111_v33 = vadd.f32 %v297_v13, %v73_v23  ;;  %v112_v34 = vadd.f32 %v295_v12, %v74_v24  ;;  %v113_v35 = vadd.f32 %v297_v13, %v75_v25 }
   0x9   :  { %v138_v36 = vadd.f32 %v107_v28, %v106_v27  ;;  %v139_v37 = vadd.f32 %v109_v30, %v108_v29  ;;  %v38_v38 = vunpack.c.l.bf16 %v18_v26  ;;  %v39_v39 = vunpack.c.h.bf16 %v18_v26  ;;  %v25_v29 = vld [vmem:[%s423_s0 + $0x58] sm:$0xff] }
   0xa   :  { %v140_v40 = vadd.f32 %v111_v33, %v110_v32  ;;  %v141_v41 = vadd.f32 %v113_v35, %v112_v34  ;;  %v40_v42 = vunpack.c.l.bf16 %v19_v31  ;;  %v41_v43 = vunpack.c.h.bf16 %v19_v31  ;;  %v26_v34 = vld [vmem:[%s423_s0 + $0x60] sm:$0xff] }
   0xb   :  { %v154_v45 = vmax.f32 %v138_v36, 0.0  ;;  %v155_v46 = vmax.f32 %v139_v37, 0.0  ;;  %v76_v47 = vmul.f32 %v291_v10, %v38_v38  ;;  %v77_v48 = vmul.f32 %v293_v11, %v39_v39 }
   0xc   :  { %v156_v49 = vmax.f32 %v140_v40, 0.0  ;;  %v157_v50 = vmax.f32 %v141_v41, 0.0  ;;  %v78_v51 = vmul.f32 %v291_v10, %v40_v42  ;;  %v79_v52 = vmul.f32 %v293_v11, %v41_v43 }
   0xd   :  { %v209_v54 = vpack.c.bf16 %v155_v46, %v154_v45  ;;  %v114_v55 = vadd.f32 %v295_v12, %v76_v47  ;;  %v115_v56 = vadd.f32 %v297_v13, %v77_v48  ;;  %v42_v57 = vunpack.c.l.bf16 %v20_v44  ;;  %v27_v46 = vld [vmem:[%s423_s0 + $0x68] sm:$0xff] }
   0xe   :  { %v214_v59 = vpack.c.bf16 %v157_v50, %v156_v49  ;;  %v116_v60 = vadd.f32 %v295_v12, %v78_v51  ;;  %v117_v61 = vadd.f32 %v297_v13, %v79_v52  ;;  %v43_v62 = vunpack.c.h.bf16 %v20_v44 }
   0xf   :  { %210 = vst [vmem:[%s426_s3] sm:$0xff] %v209_v54   ;;  %v142_v63 = vadd.f32 %v115_v56, %v114_v55  ;;  %v44_v0 = vunpack.c.l.bf16 %v21_v53  ;;  %v45_v1 = vunpack.c.h.bf16 %v21_v53  ;;  %v80_v2 = vmul.f32 %v291_v10, %v42_v57  ;;  %v28_v56 = vld [vmem:[%s423_s0 + $0x70] sm:$0xff] }
  0x10   :  { %246 = vst [vmem:[%s426_s3 + $0x8] sm:$0xff] %v214_v59   ;;  %v143_v4 = vadd.f32 %v117_v61, %v116_v60  ;;  %v81_v5 = vmul.f32 %v293_v11, %v43_v62  ;;  %v46_v6 = vunpack.c.l.bf16 %v22_v58  ;;  %v47_v7 = vunpack.c.h.bf16 %v22_v58 }
  0x11   :  { %v158_v8 = vmax.f32 %v142_v63, 0.0  ;;  %v82_v9 = vmul.f32 %v291_v10, %v44_v0  ;;  %v83_v14 = vmul.f32 %v293_v11, %v45_v1  ;;  %v118_v15 = vadd.f32 %v295_v12, %v80_v2  ;;  %v29_v1 = vld [vmem:[%s423_s0 + $0x78] sm:$0xff] }
  0x12   :  { %v159_v16 = vmax.f32 %v143_v4, 0.0  ;;  %v119_v17 = vadd.f32 %v297_v13, %v81_v5  ;;  %v48_v18 = vunpack.c.l.bf16 %v23_v3  ;;  %v49_v19 = vunpack.c.h.bf16 %v23_v3 }
  0x13   :  { %v120_v21 = vadd.f32 %v295_v12, %v82_v9  ;;  %v121_v22 = vadd.f32 %v297_v13, %v83_v14  ;;  %v84_v23 = vmul.f32 %v291_v10, %v46_v6  ;;  %v85_v24 = vmul.f32 %v293_v11, %v47_v7 }
  0x14   :  { %v219_v25 = vpack.c.bf16 %v159_v16, %v158_v8  ;;  %v144_v26 = vadd.f32 %v119_v17, %v118_v15  ;;  %v86_v27 = vmul.f32 %v291_v10, %v48_v18  ;;  %v87_v28 = vmul.f32 %v293_v11, %v49_v19 }
  0x15   :  { %v145_v30 = vadd.f32 %v121_v22, %v120_v21  ;;  %v122_v31 = vadd.f32 %v295_v12, %v84_v23  ;;  %v123_v32 = vadd.f32 %v297_v13, %v85_v24  ;;  %v50_v33 = vunpack.c.l.bf16 %v24_v20 }
  0x16   :  { %247 = vst [vmem:[%s426_s3 + $0x10] sm:$0xff] %v219_v25   ;;  %v160_v35 = vmax.f32 %v144_v26, 0.0  ;;  %v124_v36 = vadd.f32 %v295_v12, %v86_v27  ;;  %v125_v37 = vadd.f32 %v297_v13, %v87_v28  ;;  %v51_v38 = vunpack.c.h.bf16 %v24_v20 }
  0x17   :  { %v161_v39 = vmax.f32 %v145_v30, 0.0  ;;  %v146_v40 = vadd.f32 %v123_v32, %v122_v31  ;;  %v52_v41 = vunpack.c.l.bf16 %v25_v29  ;;  %v53_v42 = vunpack.c.h.bf16 %v25_v29 }
  0x18   :  { %v147_v43 = vadd.f32 %v125_v37, %v124_v36  ;;  %v88_v44 = vmul.f32 %v291_v10, %v50_v33  ;;  %v89_v45 = vmul.f32 %v293_v11, %v51_v38  ;;  %v54_v47 = vunpack.c.l.bf16 %v26_v34 }
  0x19   :  { %v224_v48 = vpack.c.bf16 %v161_v39, %v160_v35  ;;  %v162_v49 = vmax.f32 %v146_v40, 0.0  ;;  %v90_v50 = vmul.f32 %v291_v10, %v52_v41  ;;  %v91_v51 = vmul.f32 %v293_v11, %v53_v42 }
  0x1a   :  { %v163_v52 = vmax.f32 %v147_v43, 0.0  ;;  %v126_v53 = vadd.f32 %v295_v12, %v88_v44  ;;  %v127_v54 = vadd.f32 %v297_v13, %v89_v45  ;;  %v55_v55 = vunpack.c.h.bf16 %v26_v34 }
  0x1b   :  { %248 = vst [vmem:[%s426_s3 + $0x18] sm:$0xff] %v224_v48   ;;  %v128_v57 = vadd.f32 %v295_v12, %v90_v50  ;;  %v129_v58 = vadd.f32 %v297_v13, %v91_v51  ;;  %v56_v59 = vunpack.c.l.bf16 %v27_v46  ;;  %v57_v60 = vunpack.c.h.bf16 %v27_v46 }
  0x1c   :  { %v229_v61 = vpack.c.bf16 %v163_v52, %v162_v49  ;;  %v148_v62 = vadd.f32 %v127_v54, %v126_v53  ;;  %v92_v63 = vmul.f32 %v291_v10, %v54_v47  ;;  %v93_v0 = vmul.f32 %v293_v11, %v55_v55 }
  0x1d   :  { %v149_v2 = vadd.f32 %v129_v58, %v128_v57  ;;  %v94_v3 = vmul.f32 %v291_v10, %v56_v59  ;;  %v95_v4 = vmul.f32 %v293_v11, %v57_v60  ;;  %v58_v5 = vunpack.c.l.bf16 %v28_v56 }
  0x1e   :  { %249 = vst [vmem:[%s426_s3 + $0x20] sm:$0xff] %v229_v61   ;;  %v164_v6 = vmax.f32 %v148_v62, 0.0  ;;  %v130_v7 = vadd.f32 %v295_v12, %v92_v63  ;;  %v131_v8 = vadd.f32 %v297_v13, %v93_v0  ;;  %v59_v9 = vunpack.c.h.bf16 %v28_v56 }
  0x1f   :  { %v165_v14 = vmax.f32 %v149_v2, 0.0  ;;  %v132_v15 = vadd.f32 %v295_v12, %v94_v3  ;;  %v133_v16 = vadd.f32 %v297_v13, %v95_v4  ;;  %v60_v17 = vunpack.c.l.bf16 %v29_v1 }
  0x20   :  { %v150_v18 = vadd.f32 %v131_v8, %v130_v7  ;;  %v61_v19 = vunpack.c.h.bf16 %v29_v1  ;;  %v96_v20 = vmul.f32 %v291_v10, %v58_v5  ;;  %v97_v21 = vmul.f32 %v293_v11, %v59_v9 }
  0x21   :  { %v234_v22 = vpack.c.bf16 %v165_v14, %v164_v6  ;;  %v151_v23 = vadd.f32 %v133_v16, %v132_v15  ;;  %v98_v24 = vmul.f32 %v291_v10, %v60_v17 }
  0x22   :  { %v166_v25 = vmax.f32 %v150_v18, 0.0  ;;  %v99_v26 = vmul.f32 %v293_v11, %v61_v19  ;;  %v134_v27 = vadd.f32 %v295_v12, %v96_v20  ;;  %v135_v28 = vadd.f32 %v297_v13, %v97_v21 }
  0x23   :  { %250 = vst [vmem:[%s426_s3 + $0x28] sm:$0xff] %v234_v22   ;;  %v167_v29 = vmax.f32 %v151_v23, 0.0  ;;  %v136_v30 = vadd.f32 %v295_v12, %v98_v24 }
  0x24   :  { %v137_v31 = vadd.f32 %v297_v13, %v99_v26  ;;  %v152_v32 = vadd.f32 %v135_v28, %v134_v27 }
  0x25   :  { %v239_v33 = vpack.c.bf16 %v167_v29, %v166_v25 }
  0x26   :  { %v153_v34 = vadd.f32 %v137_v31, %v136_v30  ;;  %v168_v10 = vmax.f32 %v152_v32, 0.0 }
  0x27   :  { %251 = vst [vmem:[%s426_s3 + $0x30] sm:$0xff] %v239_v33  }
  0x28   :  { %v169_v11 = vmax.f32 %v153_v34, 0.0 }
  0x2a   :  { %v244_v35 = vpack.c.bf16 %v169_v11, %v168_v10 }
  0x2c   :  { %252 = vst [vmem:[%s426_s3 + $0x38] sm:$0xff] %v244_v35  }

// kernel: basic_block_forward.6
= control target key start
LH: loop header
LB: loop body
LE: loop exit
PB: predicated region body
PF: predicated region fallthrough
CT: control target
= control target key end

     0   :  { %vm563_vm0 = vcmask 1040384   ;;  %vm566_vm1 = vcmask 1041408   ;;  %s1102_s2 = inlined_call_operand.vmem [shape: bf16[128,128], index: 2, kind: input, shape index: {}]   ;;  %s1103_s3 = inlined_call_operand.vmem [shape: bf16[128,128], index: 3, kind: input, shape index: {}]   ;;  %s1104_s0 = inlined_call_operand.vmem [shape: bf16[128,128], index: 0, kind: input, shape index: {}]   ;;  %s1105_s1 = inlined_call_operand.vmem [shape: bf16[128,128], index: 1, kind: input, shape index: {}]   ;;  %s1106_s4 = inlined_call_operand.vmem [shape: bf16[128,256], index: 4, kind: output, shape index: {0}]   ;;  %s1107_s5 = inlined_call_operand.vmem [shape: f32[8,256], index: 5, kind: output, shape index: {1}]  }
   0x1   :  { %v722_v0 = vld [vmem:[%s1102_s2 + $0x38] sm:$0xff]  ;;  %v721_v2 = vld [vmem:[%s1102_s2 + $0x30] sm:$0xff]  ;;  %v720_v4 = vld [vmem:[%s1102_s2 + $0x28] sm:$0xff] }
   0x2   :  { %v738_v1 = vld [vmem:[%s1103_s3 + $0x38] sm:$0xff]  ;;  %147 = vmatpush.bf16.msra.mxu0 %v722_v0  ;;  %v737_v3 = vld [vmem:[%s1103_s3 + $0x30] sm:$0xff]  ;;  %739 = vmatpush.bf16.msra.mxu2 %v722_v0  ;;  %v736_v5 = vld [vmem:[%s1103_s3 + $0x28] sm:$0xff] }
   0x3   :  { %324 = vmatpush.bf16.msra.mxu1 %v738_v1  ;;  %747 = vmatpush.bf16.msra.mxu3 %v738_v1  ;;  %v719_v6 = vld [vmem:[%s1102_s2 + $0x20] sm:$0xff]  ;;  %v718_v8 = vld [vmem:[%s1102_s2 + $0x18] sm:$0xff]  ;;  %v717_v10 = vld [vmem:[%s1102_s2 + $0x10] sm:$0xff] }
   0x4   :  { %v735_v7 = vld [vmem:[%s1103_s3 + $0x20] sm:$0xff]  ;;  %v734_v9 = vld [vmem:[%s1103_s3 + $0x18] sm:$0xff]  ;;  %v733_v11 = vld [vmem:[%s1103_s3 + $0x10] sm:$0xff] }
   0x5   :  { %v716_v12 = vld [vmem:[%s1102_s2 + $0x8] sm:$0xff]  ;;  %v715_v14 = vld [vmem:[%s1102_s2] sm:$0xff]  ;;  %v709_v24 = vld [vmem:[%s1104_s0 + $0x10] sm:$0xff] }
   0x6   :  { %148 = vmatpush.bf16.msra.mxu0 %v721_v2  ;;  %740 = vmatpush.bf16.msra.mxu2 %v721_v2  ;;  %v732_v13 = vld [vmem:[%s1103_s3 + $0x8] sm:$0xff]  ;;  %v731_v15 = vld [vmem:[%s1103_s3] sm:$0xff]  ;;  %v725_v25 = vld [vmem:[%s1105_s1 + $0x10] sm:$0xff] }
   0x7   :  { %325 = vmatpush.bf16.msra.mxu1 %v737_v3  ;;  %748 = vmatpush.bf16.msra.mxu3 %v737_v3  ;;  %v707_v16 = vld [vmem:[%s1104_s0] sm:$0xff]  ;;  %v708_v20 = vld [vmem:[%s1104_s0 + $0x8] sm:$0xff]  ;;  %v713_v26 = vld [vmem:[%s1104_s0 + $0x30] sm:$0xff] }
   0x8   :  { %v723_v17 = vld [vmem:[%s1105_s1] sm:$0xff]  ;;  %v724_v21 = vld [vmem:[%s1105_s1 + $0x8] sm:$0xff]  ;;  %v729_v27 = vld [vmem:[%s1105_s1 + $0x30] sm:$0xff] }
   0x9   :  { %v711_v18 = vld [vmem:[%s1104_s0 + $0x20] sm:$0xff]  ;;  %v712_v22 = vld [vmem:[%s1104_s0 + $0x28] sm:$0xff]  ;;  %v710_v28 = vld [vmem:[%s1104_s0 + $0x18] sm:$0xff] }
   0xa   :  { %149 = vmatpush.bf16.msra.mxu0 %v720_v4  ;;  %741 = vmatpush.bf16.msra.mxu2 %v720_v4  ;;  %v727_v19 = vld [vmem:[%s1105_s1 + $0x20] sm:$0xff]  ;;  %v728_v23 = vld [vmem:[%s1105_s1 + $0x28] sm:$0xff]  ;;  %v726_v29 = vld [vmem:[%s1105_s1 + $0x18] sm:$0xff] }
   0xb   :  { %326 = vmatpush.bf16.msra.mxu1 %v736_v5  ;;  %749 = vmatpush.bf16.msra.mxu3 %v736_v5  ;;  %v714_v30 = vld [vmem:[%s1104_s0 + $0x38] sm:$0xff] }
   0xc   :  { %v730_v31 = vld [vmem:[%s1105_s1 + $0x38] sm:$0xff] }
   0xe   :  { %150 = vmatpush.bf16.msra.mxu0 %v719_v6  ;;  %742 = vmatpush.bf16.msra.mxu2 %v719_v6 }
   0xf   :  { %327 = vmatpush.bf16.msra.mxu1 %v735_v7  ;;  %750 = vmatpush.bf16.msra.mxu3 %v735_v7 }
  0x12   :  { %151 = vmatpush.bf16.msra.mxu0 %v718_v8  ;;  %743 = vmatpush.bf16.msra.mxu2 %v718_v8 }
  0x13   :  { %328 = vmatpush.bf16.msra.mxu1 %v734_v9  ;;  %751 = vmatpush.bf16.msra.mxu3 %v734_v9 }
  0x16   :  { %152 = vmatpush.bf16.msra.mxu0 %v717_v10  ;;  %744 = vmatpush.bf16.msra.mxu2 %v717_v10 }
  0x17   :  { %329 = vmatpush.bf16.msra.mxu1 %v733_v11  ;;  %752 = vmatpush.bf16.msra.mxu3 %v733_v11 }
  0x1a   :  { %153 = vmatpush.bf16.msra.mxu0 %v716_v12  ;;  %745 = vmatpush.bf16.msra.mxu2 %v716_v12 }
  0x1b   :  { %330 = vmatpush.bf16.msra.mxu1 %v732_v13  ;;  %753 = vmatpush.bf16.msra.mxu3 %v732_v13 }
  0x1e   :  { %154 = vmatpush.bf16.msra.mxu0 %v715_v14  ;;  %746 = vmatpush.bf16.msra.mxu2 %v715_v14 }
  0x1f   :  { %331 = vmatpush.bf16.msra.mxu1 %v731_v15  ;;  %754 = vmatpush.bf16.msra.mxu3 %v731_v15 }
  0x21   :  { %155 = vmatmul.bf16.vlgmr.msra.gmra.mxu0 %v707_v16  ;;  %175 = vmatmul.bf16.vlgmr.msra.gmra.mxu2 %v711_v18 }
  0x22   :  { %332 = vmatmul.bf16.vlgmr.msra.gmra.mxu1 %v723_v17  ;;  %352 = vmatmul.bf16.vlgmr.msra.gmra.mxu3 %v727_v19 }
  0x31   :  { %160 = vmatmul.bf16.gmra.mxu0 %v708_v20  ;;  %180 = vmatmul.bf16.gmra.mxu2 %v712_v22 }
  0x32   :  { %337 = vmatmul.bf16.gmra.mxu1 %v724_v21  ;;  %357 = vmatmul.bf16.gmra.mxu3 %v728_v23 }
  0x41   :  { %165 = vmatmul.bf16.gmra.mxu0 %v709_v24  ;;  %185 = vmatmul.bf16.gmra.mxu2 %v713_v26 }
  0x42   :  { %342 = vmatmul.bf16.gmra.mxu1 %v725_v25  ;;  %362 = vmatmul.bf16.gmra.mxu3 %v729_v27 }
  0x51   :  { %170 = vmatmul.bf16.gmra.mxu0 %v710_v28  ;;  %190 = vmatmul.bf16.gmra.mxu2 %v714_v30 }
  0x52   :  { %347 = vmatmul.bf16.gmra.mxu1 %v726_v29  ;;  %367 = vmatmul.bf16.gmra.mxu3 %v730_v31 }
  0x9e   :  { %v881_v32 = vpop.f32.mrf.mxu0 }
  0x9f   :  { %v883_v33 = vpop.f32.mrf.mxu1  ;;  %v493_v34 = vpack.c.bf16 %v881_v32, %v881_v32  ;;  %v395_v14 = vmul.f32 %v881_v32, %v881_v32 }
  0xa0   :  { %v525_v35 = vpack.c.bf16 %v883_v33, %v883_v33  ;;  %v455_v16 = vmul.f32 %v883_v33, %v883_v33 }
  0xa1   :  { %509 = vst [vmem:[%s1106_s4] sm:$0xf] %v493_v34 }
  0xa2   :  { %541 = vst [vmem:[%s1106_s4 + $0x4] sm:$0xf] %v525_v35 }
  0xa4   :  { %v895_v36 = vpop.f32.mrf.mxu2 }
  0xa5   :  { %v897_v37 = vpop.f32.mrf.mxu3  ;;  %v501_v39 = vpack.c.bf16 %v895_v36, %v895_v36 }
  0xa6   :  { %v899_v38 = vpop.f32.mrf.mxu0  ;;  %v533_v42 = vpack.c.bf16 %v897_v37, %v897_v37 }
  0xa7   :  { %v903_v40 = vpop.f32.mrf.mxu1  ;;  %v494_v41 = vpack.c.bf16 %v899_v38, %v899_v38  ;;  %517 = vst [vmem:[%s1106_s4 + $0x40] sm:$0xf] %v501_v39  ;;  %v396_v9 = vmul.f32 %v899_v38, %v899_v38  ;;  %v373_v18 = vadd.f32 %v899_v38, %v881_v32 }
  0xa8   :  { %v526_v43 = vpack.c.bf16 %v903_v40, %v903_v40  ;;  %549 = vst [vmem:[%s1106_s4 + $0x44] sm:$0xf] %v533_v42  ;;  %v456_v12 = vmul.f32 %v903_v40, %v903_v40  ;;  %v433_v20 = vadd.f32 %v903_v40, %v883_v33 }
  0xa9   :  { %510 = vst [vmem:[%s1106_s4 + $0x8] sm:$0xf] %v494_v41  ;;  %v411_v19 = vadd.f32 %v396_v9, %v395_v14 }
  0xaa   :  { %542 = vst [vmem:[%s1106_s4 + $0xc] sm:$0xf] %v526_v43  ;;  %v471_v21 = vadd.f32 %v456_v12, %v455_v16  ;;  %v403_v16 = vmul.f32 %v895_v36, %v895_v36 }
  0xac   :  { %v923_v44 = vpop.f32.mrf.mxu2 }
  0xad   :  { %v925_v45 = vpop.f32.mrf.mxu3  ;;  %v502_v47 = vpack.c.bf16 %v923_v44, %v923_v44 }
  0xae   :  { %v161_v46 = vpop.f32.mrf.mxu0  ;;  %v534_v50 = vpack.c.bf16 %v925_v45, %v925_v45 }
  0xaf   :  { %v338_v48 = vpop.f32.mrf.mxu1  ;;  %v495_v49 = vpack.c.bf16 %v161_v46, %v161_v46  ;;  %518 = vst [vmem:[%s1106_s4 + $0x48] sm:$0xf] %v502_v47  ;;  %v397_v15 = vmul.f32 %v161_v46, %v161_v46  ;;  %v374_v23 = vadd.f32 %v373_v18, %v161_v46 }
  0xb0   :  { %v527_v51 = vpack.c.bf16 %v338_v48, %v338_v48  ;;  %550 = vst [vmem:[%s1106_s4 + $0x4c] sm:$0xf] %v534_v50  ;;  %v457_v17 = vmul.f32 %v338_v48, %v338_v48  ;;  %v434_v25 = vadd.f32 %v433_v20, %v338_v48  ;;  %v463_v20 = vmul.f32 %v897_v37, %v897_v37 }
  0xb1   :  { %511 = vst [vmem:[%s1106_s4 + $0x10] sm:$0xf] %v495_v49  ;;  %v412_v24 = vadd.f32 %v411_v19, %v397_v15 }
  0xb2   :  { %543 = vst [vmem:[%s1106_s4 + $0x14] sm:$0xf] %v527_v51  ;;  %v472_v28 = vadd.f32 %v471_v21, %v457_v17 }
  0xb4   :  { %v943_v52 = vpop.f32.mrf.mxu2 }
  0xb5   :  { %v945_v53 = vpop.f32.mrf.mxu3  ;;  %v503_v55 = vpack.c.bf16 %v943_v52, %v943_v52 }
  0xb6   :  { %v163_v54 = vpop.f32.mrf.mxu0  ;;  %v535_v58 = vpack.c.bf16 %v945_v53, %v945_v53 }
  0xb7   :  { %v340_v56 = vpop.f32.mrf.mxu1  ;;  %v496_v57 = vpack.c.bf16 %v163_v54, %v163_v54  ;;  %519 = vst [vmem:[%s1106_s4 + $0x50] sm:$0xf] %v503_v55  ;;  %v398_v22 = vmul.f32 %v163_v54, %v163_v54  ;;  %v375_v34 = vadd.f32 %v374_v23, %v163_v54 }
  0xb8   :  { %v528_v59 = vpack.c.bf16 %v340_v56, %v340_v56  ;;  %551 = vst [vmem:[%s1106_s4 + $0x54] sm:$0xf] %v535_v58  ;;  %v458_v29 = vmul.f32 %v340_v56, %v340_v56  ;;  %v435_v35 = vadd.f32 %v434_v25, %v340_v56 }
  0xb9   :  { %512 = vst [vmem:[%s1106_s4 + $0x18] sm:$0xf] %v496_v57  ;;  %v413_v40 = vadd.f32 %v412_v24, %v398_v22  ;;  %v404_v22 = vmul.f32 %v923_v44, %v923_v44 }
  0xba   :  { %544 = vst [vmem:[%s1106_s4 + $0x1c] sm:$0xf] %v528_v59  ;;  %v473_v48 = vadd.f32 %v472_v28, %v458_v29  ;;  %v405_v28 = vmul.f32 %v943_v52, %v943_v52 }
  0xbc   :  { %v963_v60 = vpop.f32.mrf.mxu2 }
  0xbd   :  { %v965_v61 = vpop.f32.mrf.mxu3  ;;  %v504_v63 = vpack.c.bf16 %v963_v60, %v963_v60 }
  0xbe   :  { %v166_v62 = vpop.f32.mrf.mxu0  ;;  %v536_v2 = vpack.c.bf16 %v965_v61, %v965_v61 }
  0xbf   :  { %v343_v0 = vpop.f32.mrf.mxu1  ;;  %v497_v1 = vpack.c.bf16 %v166_v62, %v166_v62  ;;  %520 = vst [vmem:[%s1106_s4 + $0x58] sm:$0xf] %v504_v63  ;;  %v399_v30 = vmul.f32 %v166_v62, %v166_v62  ;;  %v376_v46 = vadd.f32 %v375_v34, %v166_v62  ;;  %v406_v34 = vmul.f32 %v963_v60, %v963_v60 }
  0xc0   :  { %v529_v3 = vpack.c.bf16 %v343_v0, %v343_v0  ;;  %552 = vst [vmem:[%s1106_s4 + $0x5c] sm:$0xf] %v536_v2  ;;  %v459_v41 = vmul.f32 %v343_v0, %v343_v0  ;;  %v436_v47 = vadd.f32 %v435_v35, %v343_v0 }
  0xc1   :  { %513 = vst [vmem:[%s1106_s4 + $0x20] sm:$0xf] %v497_v1  ;;  %v414_v49 = vadd.f32 %v413_v40, %v399_v30 }
  0xc2   :  { %545 = vst [vmem:[%s1106_s4 + $0x24] sm:$0xf] %v529_v3  ;;  %v474_v56 = vadd.f32 %v473_v48, %v459_v41 }
  0xc4   :  { %v983_v4 = vpop.f32.mrf.mxu2 }
  0xc5   :  { %v985_v5 = vpop.f32.mrf.mxu3  ;;  %v505_v7 = vpack.c.bf16 %v983_v4, %v983_v4 }
  0xc6   :  { %v168_v6 = vpop.f32.mrf.mxu0  ;;  %v537_v11 = vpack.c.bf16 %v985_v5, %v985_v5 }
  0xc7   :  { %v345_v8 = vpop.f32.mrf.mxu1  ;;  %v498_v10 = vpack.c.bf16 %v168_v6, %v168_v6  ;;  %521 = vst [vmem:[%s1106_s4 + $0x60] sm:$0xf] %v505_v7  ;;  %v400_v42 = vmul.f32 %v168_v6, %v168_v6  ;;  %v377_v54 = vadd.f32 %v376_v46, %v168_v6 }
  0xc8   :  { %v530_v13 = vpack.c.bf16 %v345_v8, %v345_v8  ;;  %553 = vst [vmem:[%s1106_s4 + $0x64] sm:$0xf] %v537_v11  ;;  %v460_v50 = vmul.f32 %v345_v8, %v345_v8  ;;  %v437_v55 = vadd.f32 %v436_v47, %v345_v8 }
  0xc9   :  { %514 = vst [vmem:[%s1106_s4 + $0x28] sm:$0xf] %v498_v10  ;;  %v415_v57 = vadd.f32 %v414_v49, %v400_v42 }
  0xca   :  { %546 = vst [vmem:[%s1106_s4 + $0x2c] sm:$0xf] %v530_v13  ;;  %v475_v1 = vadd.f32 %v474_v56, %v460_v50 }
  0xcc   :  { %v1015_v26 = vpop.f32.mrf.mxu2 }
  0xcd   :  { %v1017_v27 = vpop.f32.mrf.mxu3  ;;  %v506_v32 = vpack.c.bf16 %v1015_v26, %v1015_v26  ;;  %v408_v48 = vmul.f32 %v1015_v26, %v1015_v26 }
  0xce   :  { %v171_v31 = vpop.f32.mrf.mxu0  ;;  %v538_v39 = vpack.c.bf16 %v1017_v27, %v1017_v27 }
  0xcf   :  { %v348_v33 = vpop.f32.mrf.mxu1  ;;  %v499_v38 = vpack.c.bf16 %v171_v31, %v171_v31  ;;  %522 = vst [vmem:[%s1106_s4 + $0x68] sm:$0xf] %v506_v32  ;;  %v401_v51 = vmul.f32 %v171_v31, %v171_v31  ;;  %v378_v59 = vadd.f32 %v377_v54, %v171_v31 }
  0xd0   :  { %v531_v43 = vpack.c.bf16 %v348_v33, %v348_v33  ;;  %554 = vst [vmem:[%s1106_s4 + $0x6c] sm:$0xf] %v538_v39  ;;  %v461_v58 = vmul.f32 %v348_v33, %v348_v33  ;;  %v438_v62 = vadd.f32 %v437_v55, %v348_v33  ;;  %v465_v33 = vmul.f32 %v945_v53, %v945_v53 }
  0xd1   :  { %515 = vst [vmem:[%s1106_s4 + $0x30] sm:$0xf] %v499_v38  ;;  %v416_v2 = vadd.f32 %v415_v57, %v401_v51 }
  0xd2   :  { %547 = vst [vmem:[%s1106_s4 + $0x34] sm:$0xf] %v531_v43  ;;  %v476_v13 = vadd.f32 %v475_v1, %v461_v58 }
  0xd4   :  { %v191_v63 = vpop.f32.mrf.mxu2 }
  0xd5   :  { %v1035_v0 = vpop.f32.mrf.mxu3  ;;  %v507_v7 = vpack.c.bf16 %v191_v63, %v191_v63  ;;  %v409_v56 = vmul.f32 %v191_v63, %v191_v63 }
  0xd6   :  { %v173_v3 = vpop.f32.mrf.mxu0  ;;  %v539_v6 = vpack.c.bf16 %v1035_v0, %v1035_v0 }
  0xd7   :  { %v350_v9 = vpop.f32.mrf.mxu1  ;;  %v379_v8 = vadd.f32 %v378_v59, %v173_v3  ;;  %v402_v10 = vmul.f32 %v173_v3, %v173_v3  ;;  %v500_v11 = vpack.c.bf16 %v173_v3, %v173_v3  ;;  %523 = vst [vmem:[%s1106_s4 + $0x70] sm:$0xf] %v507_v7 }
  0xd8   :  { %v439_v12 = vadd.f32 %v438_v62, %v350_v9  ;;  %v462_v14 = vmul.f32 %v350_v9, %v350_v9  ;;  %v532_v15 = vpack.c.bf16 %v350_v9, %v350_v9  ;;  %555 = vst [vmem:[%s1106_s4 + $0x74] sm:$0xf] %v539_v6 }
  0xd9   :  { %v380_v17 = vadd.f32 %v379_v8, %v895_v36  ;;  %v417_v18 = vadd.f32 %v416_v2, %v402_v10  ;;  %516 = vst [vmem:[%s1106_s4 + $0x38] sm:$0xf] %v500_v11 }
  0xda   :  { %v440_v19 = vadd.f32 %v439_v12, %v897_v37  ;;  %v477_v21 = vadd.f32 %v476_v13, %v462_v14  ;;  %548 = vst [vmem:[%s1106_s4 + $0x3c] sm:$0xf] %v532_v15  ;;  %v464_v37 = vmul.f32 %v925_v45, %v925_v45 }
  0xdb   :  { %v381_v36 = vadd.f32 %v380_v17, %v923_v44  ;;  %v418_v23 = vadd.f32 %v417_v18, %v403_v16 }
  0xdc   :  { %v441_v24 = vadd.f32 %v440_v19, %v925_v45  ;;  %v478_v25 = vadd.f32 %v477_v21, %v463_v20  ;;  %v193_v44 = vpop.f32.mrf.mxu2 }
  0xdd   :  { %v382_v29 = vadd.f32 %v381_v36, %v943_v52  ;;  %v419_v30 = vadd.f32 %v418_v23, %v404_v22  ;;  %v370_v32 = vpop.f32.mrf.mxu3  ;;  %v508_v38 = vpack.c.bf16 %v193_v44, %v193_v44  ;;  %v466_v52 = vmul.f32 %v965_v61, %v965_v61 }
  0xde   :  { %v442_v31 = vadd.f32 %v441_v24, %v945_v53  ;;  %v479_v35 = vadd.f32 %v478_v25, %v464_v37  ;;  %v540_v41 = vpack.c.bf16 %v370_v32, %v370_v32  ;;  %v407_v53 = vmul.f32 %v983_v4, %v983_v4 }
  0xdf   :  { %v420_v45 = vadd.f32 %v419_v30, %v405_v28  ;;  %v383_v39 = vadd.f32 %v382_v29, %v963_v60  ;;  %524 = vst [vmem:[%s1106_s4 + $0x78] sm:$0xf] %v508_v38  ;;  %v467_v60 = vmul.f32 %v985_v5, %v985_v5  ;;  %v410_v2 = vmul.f32 %v193_v44, %v193_v44 }
  0xe0   :  { %v443_v40 = vadd.f32 %v442_v31, %v965_v61  ;;  %v480_v42 = vadd.f32 %v479_v35, %v465_v33  ;;  %556 = vst [vmem:[%s1106_s4 + $0x7c] sm:$0xf] %v540_v41  ;;  %v470_v7 = vmul.f32 %v370_v32, %v370_v32 }
  0xe1   :  { %v384_v43 = vadd.f32 %v383_v39, %v983_v4  ;;  %v421_v46 = vadd.f32 %v420_v45, %v406_v34  ;;  %v468_v4 = vmul.f32 %v1017_v27, %v1017_v27 }
  0xe2   :  { %v444_v47 = vadd.f32 %v443_v40, %v985_v5  ;;  %v481_v61 = vadd.f32 %v480_v42, %v466_v52  ;;  %v469_v5 = vmul.f32 %v1035_v0, %v1035_v0 }
  0xe3   :  { %v385_v49 = vadd.f32 %v384_v43, %v1015_v26  ;;  %v422_v50 = vadd.f32 %v421_v46, %v407_v53 }
  0xe4   :  { %v445_v51 = vadd.f32 %v444_v47, %v1017_v27  ;;  %v482_v54 = vadd.f32 %v481_v61, %v467_v60 }
  0xe5   :  { %v386_v55 = vadd.f32 %v385_v49, %v191_v63  ;;  %v423_v57 = vadd.f32 %v422_v50, %v408_v48 }
  0xe6   :  { %v446_v58 = vadd.f32 %v445_v51, %v1035_v0  ;;  %v483_v59 = vadd.f32 %v482_v54, %v468_v4 }
  0xe7   :  { %v424_v62 = vadd.f32 %v423_v57, %v409_v56  ;;  %v387_v1 = vadd.f32 %v386_v55, %v193_v44 }
  0xe8   :  { %v447_v26 = vadd.f32 %v446_v58, %v370_v32  ;;  %v484_v3 = vadd.f32 %v483_v59, %v469_v5 }
  0xe9   :  { %v388_v9 = vrot.slane %v387_v1, 4  ;;  %v425_v6 = vadd.f32 %v424_v62, %v410_v2 }
  0xea   :  { %v448_v8 = vrot.slane %v447_v26, 4  ;;  %v485_v27 = vadd.f32 %v484_v3, %v470_v7 }
  0xeb   :  { %v389_v10 = vadd.f32 %v388_v9, %v387_v1  ;;  %v426_v11 = vrot.slane %v425_v6, 4 }
  0xec   :  { %v449_v63 = vadd.f32 %v448_v8, %v447_v26  ;;  %v486_v12 = vrot.slane %v485_v27, 4 }
  0xed   :  { %v390_v13 = vrot.slane %v389_v10, 2  ;;  %v427_v14 = vadd.f32 %v426_v11, %v425_v6 }
  0xee   :  { %v450_v15 = vrot.slane %v449_v63, 2  ;;  %v487_v16 = vadd.f32 %v486_v12, %v485_v27 }
  0xef   :  { %v391_v0 = vadd.f32 %v390_v13, %v389_v10  ;;  %v428_v17 = vrot.slane %v427_v14, 2 }
  0xf0   :  { %v451_v18 = vadd.f32 %v450_v15, %v449_v63  ;;  %v488_v19 = vrot.slane %v487_v16, 2 }
  0xf1   :  { %v429_v20 = vadd.f32 %v428_v17, %v427_v14  ;;  %v392_v22 = vrot.slane %v391_v0, 1 }
  0xf2   :  { %v489_v21 = vadd.f32 %v488_v19, %v487_v16  ;;  %v452_v23 = vrot.slane %v451_v18, 1 }
  0xf3   :  { %v430_v36 = vrot.slane %v429_v20, 1  ;;  %v393_v28 = vadd.f32 %v392_v22, %v391_v0 }
  0xf4   :  { %v490_v24 = vrot.slane %v489_v21, 1  ;;  %v453_v30 = vadd.f32 %v452_v23, %v451_v18 }
  0xf5   :  { %v431_v37 = vadd.f32 %v430_v36, %v429_v20 }
  0xf6   :  { %v491_v25 = vadd.f32 %v490_v24, %v489_v21 }
  0xf7   :  { %v559_v29 = vrot.slane %v431_v37, 7 }
  0xf8   :  { %v560_v31 = vrot.slane %v491_v25, 7 }
  0xf9   :  { %v564_v44 = vsel %vm563_vm0, %v393_v28, %v559_v29 }
  0xfa   :  { %v567_v32 = vsel %vm566_vm1, %v564_v44, 0.0  ;;  %v565_v33 = vsel %vm563_vm0, %v453_v30, %v560_v31 }
  0xfb   :  { %569 = vst [vmem:[%s1107_s5] sm:$0xff] %v567_v32  ;;  %v568_v34 = vsel %vm566_vm1, %v565_v33, 0.0 }
  0xfc   :  { %570 = vst [vmem:[%s1107_s5 + $0x8] sm:$0xff] %v568_v34 }

</bundles_post_ra>
